<compile_context>
chip_gen: v5e
topology: v5e:2x2
jax: 0.10.0
libtpu: 0.0.40
codegen_flags: <defaults>
</compile_context>

<pallas_src>
import math

import jax
import jax.numpy as jnp
import numpy as np
from jax.experimental import pallas as pl
from jax.experimental.pallas import tpu as pltpu


# ----------------------------- Pallas kernel ---------------------------------
def _packet_time_lstm_kernel(xmd_ref, hte_ref, ct_ref, wslab_ref, w3_ref,
                             w1c_ref, w1h_ref, b1_ref, w2t_ref, b2_ref,
                             h_out_ref, pred_ref, c_out_ref, acc_ref):
    TG, PH = h_out_ref.shape
    H = hte_ref.shape[1]
    P = PH // H

    x_b = xmd_ref[0]            # (TG, PH)  X broadcast over each feature's H lanes
    m_b = xmd_ref[1]            # mask broadcast
    d_b = xmd_ref[2]            # delta broadcast

    # ---- streamed per-group matvec: cur[c,g,p*H+ho] = sum_hi Wh[f, c*H+ho, hi] * Ht[f, hi]
    # Each (c, g) step is a full (H, 128) tile (full sublane occupancy), consumed
    # immediately by a sublane reduce -> small live set, no large product temp.
    cur_rows = ([], [], [])
    for g in range(TG):                                       # TG is a static python int
        hte_g = hte_ref[g]                                    # (H, PH)
        for c in range(3):
            prod = w3_ref[c, g] * hte_g                       # (H, PH) VALU
            cur_rows[c].append(jnp.sum(prod, axis=0, keepdims=True))   # -> (1, PH)
    cur_i = jnp.concatenate(cur_rows[0], axis=0)              # (TG, PH)
    cur_o = jnp.concatenate(cur_rows[1], axis=0)
    cur_c = jnp.concatenate(cur_rows[2], axis=0)

    w = wslab_ref[...]                                        # (15, TG, PH) packed weights
    ctb = jnp.broadcast_to(ct_ref[...], (TG, PH))             # shared cell state, lane-tiled

    gate_input = cur_i + w[0] * x_b + w[3]
    gate_output = cur_o + w[1] * x_b + w[4]
    gate_pre_c = cur_c + w[2] * x_b + w[5]

    del_t1 = jax.nn.sigmoid(w[6] * d_b)
    del_t2 = jax.nn.sigmoid(w[7] * d_b)
    del_to = w[8] * d_b

    t_1t = jax.nn.sigmoid(w[9] * x_b + w[11] + del_t1)
    t_2t = jax.nn.sigmoid(w[10] * x_b + w[12] + del_t2)
    gi = jax.nn.sigmoid(gate_input + w[13] * ctb)
    gc = jnp.tanh(gate_pre_c)
    c_tilde = (1.0 - gi * t_1t) * ctb + gi * t_1t * gc
    c_new = (1.0 - gi) * ctb + gi * t_2t * gc
    go = jax.nn.sigmoid(gate_output + w[14] * c_tilde + del_to)
    h_new = go * jnp.tanh(c_tilde)

    h_out_ref[...] = m_b * h_new                              # lane-dense unmasked store

    # ---- masked partial sums for aggregate_by='Mean' (rows: c_new, h_new, mask*H)
    @pl.when(pl.program_id(0) == 0)
    def _():
        acc_ref[...] = jnp.zeros_like(acc_ref)

    acc_ref[0:1, :] = acc_ref[0:1, :] + jnp.sum(m_b * c_new, axis=0, keepdims=True)
    acc_ref[1:2, :] = acc_ref[1:2, :] + jnp.sum(m_b * h_new, axis=0, keepdims=True)
    acc_ref[2:3, :] = acc_ref[2:3, :] + jnp.sum(m_b, axis=0, keepdims=True)

    # ---- fused epilogue (masked mean + MLP + softmax), exact f32 on VPU/XLU/EUP
    @pl.when(pl.program_id(0) == pl.num_programs(0) - 1)
    def _():
        acc_c = acc_ref[0:1, :]                               # (1, PH)
        acc_h = acc_ref[1:2, :]
        n = jnp.sum(acc_ref[2:3, :], axis=1, keepdims=True) * (1.0 / H)   # (1,1) current count
        inv_n = 1.0 / n                                       # module assumes mask.any()

        # layer 1: the P-fold + mean is absorbed into pre-folded W1c/W1h (prep time).
        z = (jnp.sum(w1c_ref[...] * acc_c, axis=1, keepdims=True) +
             jnp.sum(w1h_ref[...] * acc_h, axis=1, keepdims=True))        # (2H, 1)
        hid = jnp.maximum(z * inv_n + b1_ref[...], 0.0)                   # (2H, 1)
        # layer 2
        logits = jnp.sum(hid * w2t_ref[...], axis=0, keepdims=True) + b2_ref[...]   # (1, C)
        mx = jnp.max(logits, axis=1, keepdims=True)
        e = jnp.exp(logits - mx)
        pred_ref[...] = e / jnp.sum(e, axis=1, keepdims=True)

        # C_curr: P-fold of the masked c sums via lane rotations (XLU), then mean.
        s = acc_c
        for p in range(1, P):
            s = s + pltpu.roll(acc_c, p * H, 1)
        c_out_ref[...] = s[:, 0:H] * inv_n


# ------------------------- one-time weight preprocessing ----------------------
def prepare_params(params, boundary=-0.01):
    """Weight-only preprocessing, hoisted out of the per-packet forward path.
    Re-run only when the weights change (i.e. after an optimizer step)."""
    f32 = jnp.float32
    lstm_w = jnp.asarray(params["lstm_weights"], f32)          # (F, 3H, H+1)
    F = lstm_w.shape[0]
    H = lstm_w.shape[2] - 1
    assert 128 % H == 0, "hidden_size must divide 128 for lane packing"
    P = 128 // H
    assert F % P == 0, "n_features must be a multiple of 128 // hidden_size"
    G = F // P
    PH = P * H

    w_x = lstm_w[:, :, 0]                                      # (F, 3H)
    w_h = lstm_w[:, :, 1:]                                     # (F, 3H, H)
    b = jnp.asarray(params["lstm_bias"], f32)
    wxt = jnp.asarray(params["lstm_xT_weights"], f32)[:, :, 0]
    bxt = jnp.asarray(params["lstm_xT_bias"], f32)
    wdt = jnp.asarray(params["lstm_delT_weights"], f32)[:, :, 0]
    wdt = wdt.at[:, H].set(jnp.minimum(wdt[:, H], boundary))   # forward()'s weight constraint
    wci = jnp.asarray(params["lstm_c_inp_weights"], f32)
    wco = jnp.asarray(params["lstm_c_out_weights"], f32)

    def pk(a):                  # (F, H) -> (G, P*H): features packed into the 128-lane axis
        return a.reshape(G, PH)

    wslab = jnp.stack([pk(a) for a in (
        w_x[:, 0:H], w_x[:, H:2 * H], w_x[:, 2 * H:],
        b[:, 0:H], b[:, H:2 * H], b[:, 2 * H:],
        wdt[:, 0:H], wdt[:, H:2 * H], wdt[:, 2 * H:],
        wxt[:, 0:H], wxt[:, H:],
        bxt[:, 0:H], bxt[:, H:],
        wci, wco)], axis=0)                                    # (15, G, PH)

    # W_h relayout: w3[c, g, h_in, p*H + h_out] = W_h[g*P+p, c*H + h_out, h_in]
    w3 = (w_h.reshape(G, P, 3, H, H)
          .transpose(2, 0, 4, 1, 3)
          .reshape(3, G, H, PH))

    ct = jnp.tile(jnp.asarray(params["c_t"], f32), P).reshape(1, PH)

    # MLP weights with the P-fold (Mean aggregation) absorbed: W1c[j, p*H+h] = W1[j, h].
    w1 = jnp.asarray(params["mlp_w1"], f32)                    # (2H, 2H)
    ones_p = jnp.ones((1, P), f32)
    w1c = jnp.kron(ones_p, w1[:, 0:H])                         # (2H, PH)
    w1h = jnp.kron(ones_p, w1[:, H:])                          # (2H, PH)
    b1 = jnp.asarray(params["mlp_b1"], f32).reshape(2 * H, 1)
    w2t = jnp.asarray(params["mlp_w2"], f32).T                 # (2H, C)
    b2 = jnp.asarray(params["mlp_b2"], f32).reshape(1, -1)

    return dict(wslab=wslab, w3=w3, ct=ct, w1c=w1c, w1h=w1h, b1=b1, w2t=w2t, b2=b2)


# ------------------------------- per-call forward ------------------------------
@jax.jit
def packet_time_lstm_forward(prep, tim, x, mask, ht, last_occured):
    f32 = jnp.float32
    F, H = ht.shape
    P = 128 // H
    G = F // P
    PH = P * H
    TG = G            # single grid step at this size; tile G (8-aligned) for large F
    C = prep["w2t"].shape[1]
    # TODO(synk): for large F on v7x, cap TG for the 64 MiB VMEM, mark the G axis
    # 'parallel' with per-step partial sums (instead of the resident accumulator)
    # to use both TensorCores.

    # --- per-call (dynamic) inputs only ---
    delta = (tim - last_occured).astype(f32)
    xmd = jnp.stack([x.astype(f32), mask.astype(f32), delta], axis=0)      # (3, F)
    xmd_b = jnp.broadcast_to(xmd[:, :, None], (3, F, H)).reshape(3, G, PH)
    # hte[g, h_in, p*H + h_out] = Ht[g*P+p, h_in]
    # TODO(synk): for large F, move this H-fold broadcast in-kernel (per-group expansion
    # against a constant 0/1 matrix) so Ht's HBM traffic is not amplified H-fold.
    hte = jnp.broadcast_to(
        ht.astype(f32).reshape(G, P, H).transpose(0, 2, 1)[:, :, :, None],
        (G, H, P, H)).reshape(G, H, PH)

    flops = 2 * F * 3 * H * H + 80 * F * H + 8 * H * PH + 8 * H * C
    trans = 7 * F * H + C
    bytes_accessed = 4 * (3 * G * PH + G * H * PH + PH + 15 * G * PH + 3 * G * H * PH
                          + 2 * 2 * H * PH + 2 * H + 2 * H * C + C + G * PH + C + H)

    h_packed, pred, c_row = pl.pallas_call(
        _packet_time_lstm_kernel,
        out_shape=(jax.ShapeDtypeStruct((G, PH), f32),      # H_curr, lane-packed
                   jax.ShapeDtypeStruct((1, C), f32),       # softmax(mlp(io))
                   jax.ShapeDtypeStruct((1, H), f32)),      # C_curr
        grid=(G // TG,),
        in_specs=[
            pl.BlockSpec((3, TG, PH), lambda i: (0, i, 0)),        # x/mask/delta broadcast
            pl.BlockSpec((TG, H, PH), lambda i: (i, 0, 0)),        # Ht expanded over h_out
            pl.BlockSpec((1, PH), lambda i: (0, 0)),               # c_t lane-tiled
            pl.BlockSpec((15, TG, PH), lambda i: (0, i, 0)),       # packed per-feature weights
            pl.BlockSpec((3, TG, H, PH), lambda i: (0, i, 0, 0)),  # W_h relayout
            pl.BlockSpec((2 * H, PH), lambda i: (0, 0)),           # mlp W1 (C half, P-folded)
            pl.BlockSpec((2 * H, PH), lambda i: (0, 0)),           # mlp W1 (H half, P-folded)
            pl.BlockSpec((2 * H, 1), lambda i: (0, 0)),            # mlp b1 (sublane vector)
            pl.BlockSpec((2 * H, C), lambda i: (0, 0)),            # mlp W2^T
            pl.BlockSpec((1, C), lambda i: (0, 0)),                # mlp b2
        ],
        out_specs=(
            pl.BlockSpec((TG, PH), lambda i: (i, 0)),
            pl.BlockSpec((1, C), lambda i: (0, 0)),
            pl.BlockSpec((1, H), lambda i: (0, 0)),
        ),
        scratch_shapes=[pltpu.VMEM((3, PH), f32)],
        compiler_params=pltpu.CompilerParams(dimension_semantics=("arbitrary",)),
        cost_estimate=pl.CostEstimate(flops=flops, transcendentals=trans,
                                      bytes_accessed=bytes_accessed),
    )(xmd_b, hte, prep["ct"], prep["wslab"], prep["w3"],
      prep["w1c"], prep["w1h"], prep["b1"], prep["w2t"], prep["b2"])

    h_curr = h_packed.reshape(F, H)
    return pred[0], h_curr, c_row[0]


# --------------------------- numpy reference -----------------------------------
def reference_forward_np(params, tim, X, mask, Ht, last_occured, boundary=-0.01):
    p = {k: np.asarray(v, np.float32) for k, v in params.items()}
    X = np.asarray(X, np.float32)
    mask_np = np.asarray(mask).astype(bool)
    Ht = np.asarray(Ht, np.float32)
    last = np.asarray(last_occured)
    F, H = Ht.shape
    curr = np.nonzero(mask_np)[0]
    Xc = X[curr]
    delta = (tim - last).astype(np.float32)

    wdT = p["lstm_delT_weights"].copy()
    wdT[:, H, :] = np.minimum(wdT[:, H, :], boundary)

    cur_input = np.concatenate([Xc[:, None], Ht[curr]], axis=-1)
    cur_output = np.einsum("fij,fj->fi", p["lstm_weights"][curr], cur_input) + p["lstm_bias"][curr]
    xm = p["lstm_xT_weights"][curr, :, 0] * Xc[:, None] + p["lstm_xT_bias"][curr]
    dl = wdT[curr, :, 0] * delta[curr][:, None]

    sig = lambda z: 1.0 / (1.0 + np.exp(-z))
    gi, go, gc = cur_output[:, :H], cur_output[:, H:2 * H], cur_output[:, 2 * H:]
    xm1, xm2 = xm[:, :H], xm[:, H:]
    d1, d2, do = sig(dl[:, :H]), sig(dl[:, H:2 * H]), dl[:, 2 * H:]
    T1, T2 = sig(xm1 + d1), sig(xm2 + d2)
    ct = p["c_t"][None, :]
    gi = sig(gi + p["lstm_c_inp_weights"][curr] * ct)
    gc = np.tanh(gc)
    c_tilde = (1 - gi * T1) * ct + gi * T1 * gc
    c_new = (1 - gi) * ct + gi * T2 * gc
    go = sig(go + p["lstm_c_out_weights"][curr] * c_tilde + do)

    H_curr = np.zeros((F, H), np.float32)
    H_curr[curr] = go * np.tanh(c_tilde)
    C_curr = c_new.mean(axis=0)
    io = np.concatenate([C_curr, H_curr[curr].mean(axis=0)])
    hid = np.maximum(io @ p["mlp_w1"].T + p["mlp_b1"], 0.0)
    logits = hid @ p["mlp_w2"].T + p["mlp_b2"]
    e = np.exp(logits - logits.max())
    return e / e.sum(), H_curr, C_curr


# ----------------------------------- main ---------------------------------------
if __name__ == "__main__":
    F = 16          # n_features
    H = 32          # hidden_size
    C = 4           # n_class
    boundary = -0.01

    key = jax.random.PRNGKey(0)
    ks = jax.random.split(key, 12)
    he_lstm = math.sqrt(2.0 / (H + 1))
    he_1 = math.sqrt(2.0)

    params = {
        "lstm_weights": he_lstm * jax.random.normal(ks[0], (F, 3 * H, H + 1), jnp.float32),
        "lstm_bias": jnp.zeros((F, 3 * H), jnp.float32),
        "lstm_xT_weights": he_1 * jax.random.normal(ks[1], (F, 2 * H, 1), jnp.float32),
        "lstm_xT_bias": jnp.zeros((F, 2 * H), jnp.float32),
        "lstm_delT_weights": he_1 * jax.random.normal(ks[2], (F, 3 * H, 1), jnp.float32),
        "lstm_c_inp_weights": jax.random.normal(ks[3], (F, H), jnp.float32),
        "lstm_c_out_weights": jax.random.normal(ks[4], (F, H), jnp.float32),
        "mlp_w1": 0.1 * jax.random.normal(ks[5], (2 * H, 2 * H), jnp.float32),
        "mlp_b1": 0.01 * jax.random.normal(ks[6], (2 * H,), jnp.float32),
        "mlp_w2": 0.1 * jax.random.normal(ks[7], (C, 2 * H), jnp.float32),
        "mlp_b2": 0.01 * jax.random.normal(ks[8], (C,), jnp.float32),
        "c_t": jnp.zeros((H,), jnp.float32),   # module state, zeros as in __init__
    }

    # one-time weight prep (cache across forward calls; recompute after weight updates)
    prep = prepare_params(params, boundary=boundary)

    tim = 5
    X = jax.random.normal(ks[9], (F,), jnp.float32)
    mask = (jax.random.uniform(ks[10], (F,)) > 0.4)
    mask = mask.at[0].set(True)               # module assumes at least one current feature
    Ht = 0.5 * jax.random.normal(ks[11], (F, H), jnp.float32)
    last_occured = jnp.arange(F, dtype=jnp.int32) % 4

    pred, h_curr, c_curr = packet_time_lstm_forward(prep, tim, X, mask, Ht, last_occured)
    jax.block_until_ready((pred, h_curr, c_curr))

    pred_ref, h_ref, c_ref = reference_forward_np(
        params, tim, X, mask, Ht, last_occured, boundary=boundary)
    np.testing.assert_allclose(np.asarray(pred), pred_ref, rtol=1e-4, atol=1e-5)
    np.testing.assert_allclose(np.asarray(h_curr), h_ref, rtol=1e-4, atol=1e-5)
    np.testing.assert_allclose(np.asarray(c_curr), c_ref, rtol=1e-4, atol=1e-5)

    # TODO(synk): stateful bookkeeping (feat_count/feat_observed updates, last_occured
    # writeback, drop_features re-init, normalization running stats, c_global writeback,
    # prediction logging) is host-side control flow and not part of the numeric forward.
    print("KERNEL_OK")
</pallas_src>

<mosaic_0001>
module attributes {stable_mosaic.version = 11 : i64} {
  func.func @_packet_time_lstm_kernel(%arg0: i32, %arg1: memref<3x4x128xf32, #tpu.memory_space<vmem>>, %arg2: memref<4x32x128xf32, #tpu.memory_space<vmem>>, %arg3: memref<1x128xf32, #tpu.memory_space<vmem>>, %arg4: memref<15x4x128xf32, #tpu.memory_space<vmem>>, %arg5: memref<3x4x32x128xf32, #tpu.memory_space<vmem>>, %arg6: memref<64x128xf32, #tpu.memory_space<vmem>>, %arg7: memref<64x128xf32, #tpu.memory_space<vmem>>, %arg8: memref<64x1xf32, #tpu.memory_space<vmem>>, %arg9: memref<64x4xf32, #tpu.memory_space<vmem>>, %arg10: memref<1x4xf32, #tpu.memory_space<vmem>>, %arg11: memref<4x128xf32, #tpu.memory_space<vmem>>, %arg12: memref<1x4xf32, #tpu.memory_space<vmem>>, %arg13: memref<1x32xf32, #tpu.memory_space<vmem>>, %arg14: memref<3x128xf32, #tpu.memory_space<vmem>>) attributes {dimension_semantics = [#tpu.dimension_semantics<arbitrary>], iteration_bounds = array<i64: 1>, scalar_prefetch = 0 : i64, scratch_operands = 1 : i64, tpu.core_type = #tpu.core_type<tc>, window_params = [{transform_indices = @transform_0, window_bounds = array<i64: 3, 4, 128>}, {transform_indices = @transform_1, window_bounds = array<i64: 4, 32, 128>}, {pipeline_mode = #tpu.pipeline_mode<synchronous>, transform_indices = @transform_2, window_bounds = array<i64: 1, 128>}, {transform_indices = @transform_3, window_bounds = array<i64: 15, 4, 128>}, {transform_indices = @transform_4, window_bounds = array<i64: 3, 4, 32, 128>}, {pipeline_mode = #tpu.pipeline_mode<synchronous>, transform_indices = @transform_5, window_bounds = array<i64: 64, 128>}, {pipeline_mode = #tpu.pipeline_mode<synchronous>, transform_indices = @transform_6, window_bounds = array<i64: 64, 128>}, {pipeline_mode = #tpu.pipeline_mode<synchronous>, transform_indices = @transform_7, window_bounds = array<i64: 64, 1>}, {pipeline_mode = #tpu.pipeline_mode<synchronous>, transform_indices = @transform_8, window_bounds = array<i64: 64, 4>}, {pipeline_mode = #tpu.pipeline_mode<synchronous>, transform_indices = @transform_9, window_bounds = array<i64: 1, 4>}, {transform_indices = @transform_10, window_bounds = array<i64: 4, 128>}, {pipeline_mode = #tpu.pipeline_mode<synchronous>, transform_indices = @transform_11, window_bounds = array<i64: 1, 4>}, {pipeline_mode = #tpu.pipeline_mode<synchronous>, transform_indices = @transform_12, window_bounds = array<i64: 1, 32>}]} {
    %c0 = arith.constant 0 : index
    %c0_0 = arith.constant 0 : index
    %c0_1 = arith.constant 0 : index
    %0 = vector.load %arg1[%c0, %c0_0, %c0_1] : memref<3x4x128xf32, #tpu.memory_space<vmem>>, vector<1x4x128xf32>
    %1 = vector.shape_cast %0 : vector<1x4x128xf32> to vector<4x128xf32>
    %c1 = arith.constant 1 : index
    %c0_2 = arith.constant 0 : index
    %c0_3 = arith.constant 0 : index
    %2 = vector.load %arg1[%c1, %c0_2, %c0_3] : memref<3x4x128xf32, #tpu.memory_space<vmem>>, vector<1x4x128xf32>
    %3 = vector.shape_cast %2 : vector<1x4x128xf32> to vector<4x128xf32>
    %c2 = arith.constant 2 : index
    %c0_4 = arith.constant 0 : index
    %c0_5 = arith.constant 0 : index
    %4 = vector.load %arg1[%c2, %c0_4, %c0_5] : memref<3x4x128xf32, #tpu.memory_space<vmem>>, vector<1x4x128xf32>
    %5 = vector.shape_cast %4 : vector<1x4x128xf32> to vector<4x128xf32>
    %c0_6 = arith.constant 0 : index
    %c0_7 = arith.constant 0 : index
    %c0_8 = arith.constant 0 : index
    %6 = vector.load %arg2[%c0_6, %c0_7, %c0_8] : memref<4x32x128xf32, #tpu.memory_space<vmem>>, vector<1x32x128xf32>
    %7 = vector.shape_cast %6 : vector<1x32x128xf32> to vector<32x128xf32>
    %c0_9 = arith.constant 0 : index
    %c0_10 = arith.constant 0 : index
    %c0_11 = arith.constant 0 : index
    %c0_12 = arith.constant 0 : index
    %8 = vector.load %arg5[%c0_9, %c0_10, %c0_11, %c0_12] : memref<3x4x32x128xf32, #tpu.memory_space<vmem>>, vector<1x1x32x128xf32>
    %9 = vector.shape_cast %8 : vector<1x1x32x128xf32> to vector<32x128xf32>
    %10 = arith.mulf %9, %7 : vector<32x128xf32>
    %cst = arith.constant dense<0.000000e+00> : vector<128xf32>
    %11 = vector.multi_reduction <add>, %10, %cst [0] : vector<32x128xf32> to vector<128xf32>
    %12 = vector.shape_cast %11 : vector<128xf32> to vector<1x128xf32>
    %c1_13 = arith.constant 1 : index
    %c0_14 = arith.constant 0 : index
    %c0_15 = arith.constant 0 : index
    %c0_16 = arith.constant 0 : index
    %13 = vector.load %arg5[%c1_13, %c0_14, %c0_15, %c0_16] : memref<3x4x32x128xf32, #tpu.memory_space<vmem>>, vector<1x1x32x128xf32>
    %14 = vector.shape_cast %13 : vector<1x1x32x128xf32> to vector<32x128xf32>
    %15 = arith.mulf %14, %7 : vector<32x128xf32>
    %cst_17 = arith.constant dense<0.000000e+00> : vector<128xf32>
    %16 = vector.multi_reduction <add>, %15, %cst_17 [0] : vector<32x128xf32> to vector<128xf32>
    %17 = vector.shape_cast %16 : vector<128xf32> to vector<1x128xf32>
    %c2_18 = arith.constant 2 : index
    %c0_19 = arith.constant 0 : index
    %c0_20 = arith.constant 0 : index
    %c0_21 = arith.constant 0 : index
    %18 = vector.load %arg5[%c2_18, %c0_19, %c0_20, %c0_21] : memref<3x4x32x128xf32, #tpu.memory_space<vmem>>, vector<1x1x32x128xf32>
    %19 = vector.shape_cast %18 : vector<1x1x32x128xf32> to vector<32x128xf32>
    %20 = arith.mulf %19, %7 : vector<32x128xf32>
    %cst_22 = arith.constant dense<0.000000e+00> : vector<128xf32>
    %21 = vector.multi_reduction <add>, %20, %cst_22 [0] : vector<32x128xf32> to vector<128xf32>
    %22 = vector.shape_cast %21 : vector<128xf32> to vector<1x128xf32>
    %c1_23 = arith.constant 1 : index
    %c0_24 = arith.constant 0 : index
    %c0_25 = arith.constant 0 : index
    %23 = vector.load %arg2[%c1_23, %c0_24, %c0_25] : memref<4x32x128xf32, #tpu.memory_space<vmem>>, vector<1x32x128xf32>
    %24 = vector.shape_cast %23 : vector<1x32x128xf32> to vector<32x128xf32>
    %c0_26 = arith.constant 0 : index
    %c1_27 = arith.constant 1 : index
    %c0_28 = arith.constant 0 : index
    %c0_29 = arith.constant 0 : index
    %25 = vector.load %arg5[%c0_26, %c1_27, %c0_28, %c0_29] : memref<3x4x32x128xf32, #tpu.memory_space<vmem>>, vector<1x1x32x128xf32>
    %26 = vector.shape_cast %25 : vector<1x1x32x128xf32> to vector<32x128xf32>
    %27 = arith.mulf %26, %24 : vector<32x128xf32>
    %cst_30 = arith.constant dense<0.000000e+00> : vector<128xf32>
    %28 = vector.multi_reduction <add>, %27, %cst_30 [0] : vector<32x128xf32> to vector<128xf32>
    %29 = vector.shape_cast %28 : vector<128xf32> to vector<1x128xf32>
    %c1_31 = arith.constant 1 : index
    %c1_32 = arith.constant 1 : index
    %c0_33 = arith.constant 0 : index
    %c0_34 = arith.constant 0 : index
    %30 = vector.load %arg5[%c1_31, %c1_32, %c0_33, %c0_34] : memref<3x4x32x128xf32, #tpu.memory_space<vmem>>, vector<1x1x32x128xf32>
    %31 = vector.shape_cast %30 : vector<1x1x32x128xf32> to vector<32x128xf32>
    %32 = arith.mulf %31, %24 : vector<32x128xf32>
    %cst_35 = arith.constant dense<0.000000e+00> : vector<128xf32>
    %33 = vector.multi_reduction <add>, %32, %cst_35 [0] : vector<32x128xf32> to vector<128xf32>
    %34 = vector.shape_cast %33 : vector<128xf32> to vector<1x128xf32>
    %c2_36 = arith.constant 2 : index
    %c1_37 = arith.constant 1 : index
    %c0_38 = arith.constant 0 : index
    %c0_39 = arith.constant 0 : index
    %35 = vector.load %arg5[%c2_36, %c1_37, %c0_38, %c0_39] : memref<3x4x32x128xf32, #tpu.memory_space<vmem>>, vector<1x1x32x128xf32>
    %36 = vector.shape_cast %35 : vector<1x1x32x128xf32> to vector<32x128xf32>
    %37 = arith.mulf %36, %24 : vector<32x128xf32>
    %cst_40 = arith.constant dense<0.000000e+00> : vector<128xf32>
    %38 = vector.multi_reduction <add>, %37, %cst_40 [0] : vector<32x128xf32> to vector<128xf32>
    %39 = vector.shape_cast %38 : vector<128xf32> to vector<1x128xf32>
    %c2_41 = arith.constant 2 : index
    %c0_42 = arith.constant 0 : index
    %c0_43 = arith.constant 0 : index
    %40 = vector.load %arg2[%c2_41, %c0_42, %c0_43] : memref<4x32x128xf32, #tpu.memory_space<vmem>>, vector<1x32x128xf32>
    %41 = vector.shape_cast %40 : vector<1x32x128xf32> to vector<32x128xf32>
    %c0_44 = arith.constant 0 : index
    %c2_45 = arith.constant 2 : index
    %c0_46 = arith.constant 0 : index
    %c0_47 = arith.constant 0 : index
    %42 = vector.load %arg5[%c0_44, %c2_45, %c0_46, %c0_47] : memref<3x4x32x128xf32, #tpu.memory_space<vmem>>, vector<1x1x32x128xf32>
    %43 = vector.shape_cast %42 : vector<1x1x32x128xf32> to vector<32x128xf32>
    %44 = arith.mulf %43, %41 : vector<32x128xf32>
    %cst_48 = arith.constant dense<0.000000e+00> : vector<128xf32>
    %45 = vector.multi_reduction <add>, %44, %cst_48 [0] : vector<32x128xf32> to vector<128xf32>
    %46 = vector.shape_cast %45 : vector<128xf32> to vector<1x128xf32>
    %c1_49 = arith.constant 1 : index
    %c2_50 = arith.constant 2 : index
    %c0_51 = arith.constant 0 : index
    %c0_52 = arith.constant 0 : index
    %47 = vector.load %arg5[%c1_49, %c2_50, %c0_51, %c0_52] : memref<3x4x32x128xf32, #tpu.memory_space<vmem>>, vector<1x1x32x128xf32>
    %48 = vector.shape_cast %47 : vector<1x1x32x128xf32> to vector<32x128xf32>
    %49 = arith.mulf %48, %41 : vector<32x128xf32>
    %cst_53 = arith.constant dense<0.000000e+00> : vector<128xf32>
    %50 = vector.multi_reduction <add>, %49, %cst_53 [0] : vector<32x128xf32> to vector<128xf32>
    %51 = vector.shape_cast %50 : vector<128xf32> to vector<1x128xf32>
    %c2_54 = arith.constant 2 : index
    %c2_55 = arith.constant 2 : index
    %c0_56 = arith.constant 0 : index
    %c0_57 = arith.constant 0 : index
    %52 = vector.load %arg5[%c2_54, %c2_55, %c0_56, %c0_57] : memref<3x4x32x128xf32, #tpu.memory_space<vmem>>, vector<1x1x32x128xf32>
    %53 = vector.shape_cast %52 : vector<1x1x32x128xf32> to vector<32x128xf32>
    %54 = arith.mulf %53, %41 : vector<32x128xf32>
    %cst_58 = arith.constant dense<0.000000e+00> : vector<128xf32>
    %55 = vector.multi_reduction <add>, %54, %cst_58 [0] : vector<32x128xf32> to vector<128xf32>
    %56 = vector.shape_cast %55 : vector<128xf32> to vector<1x128xf32>
    %c3 = arith.constant 3 : index
    %c0_59 = arith.constant 0 : index
    %c0_60 = arith.constant 0 : index
    %57 = vector.load %arg2[%c3, %c0_59, %c0_60] : memref<4x32x128xf32, #tpu.memory_space<vmem>>, vector<1x32x128xf32>
    %58 = vector.shape_cast %57 : vector<1x32x128xf32> to vector<32x128xf32>
    %c0_61 = arith.constant 0 : index
    %c3_62 = arith.constant 3 : index
    %c0_63 = arith.constant 0 : index
    %c0_64 = arith.constant 0 : index
    %59 = vector.load %arg5[%c0_61, %c3_62, %c0_63, %c0_64] : memref<3x4x32x128xf32, #tpu.memory_space<vmem>>, vector<1x1x32x128xf32>
    %60 = vector.shape_cast %59 : vector<1x1x32x128xf32> to vector<32x128xf32>
    %61 = arith.mulf %60, %58 : vector<32x128xf32>
    %cst_65 = arith.constant dense<0.000000e+00> : vector<128xf32>
    %62 = vector.multi_reduction <add>, %61, %cst_65 [0] : vector<32x128xf32> to vector<128xf32>
    %63 = vector.shape_cast %62 : vector<128xf32> to vector<1x128xf32>
    %c1_66 = arith.constant 1 : index
    %c3_67 = arith.constant 3 : index
    %c0_68 = arith.constant 0 : index
    %c0_69 = arith.constant 0 : index
    %64 = vector.load %arg5[%c1_66, %c3_67, %c0_68, %c0_69] : memref<3x4x32x128xf32, #tpu.memory_space<vmem>>, vector<1x1x32x128xf32>
    %65 = vector.shape_cast %64 : vector<1x1x32x128xf32> to vector<32x128xf32>
    %66 = arith.mulf %65, %58 : vector<32x128xf32>
    %cst_70 = arith.constant dense<0.000000e+00> : vector<128xf32>
    %67 = vector.multi_reduction <add>, %66, %cst_70 [0] : vector<32x128xf32> to vector<128xf32>
    %68 = vector.shape_cast %67 : vector<128xf32> to vector<1x128xf32>
    %c2_71 = arith.constant 2 : index
    %c3_72 = arith.constant 3 : index
    %c0_73 = arith.constant 0 : index
    %c0_74 = arith.constant 0 : index
    %69 = vector.load %arg5[%c2_71, %c3_72, %c0_73, %c0_74] : memref<3x4x32x128xf32, #tpu.memory_space<vmem>>, vector<1x1x32x128xf32>
    %70 = vector.shape_cast %69 : vector<1x1x32x128xf32> to vector<32x128xf32>
    %71 = arith.mulf %70, %58 : vector<32x128xf32>
    %cst_75 = arith.constant dense<0.000000e+00> : vector<128xf32>
    %72 = vector.multi_reduction <add>, %71, %cst_75 [0] : vector<32x128xf32> to vector<128xf32>
    %73 = vector.shape_cast %72 : vector<128xf32> to vector<1x128xf32>
    %74 = tpu.concatenate %12, %29, %46, %63 in 0 : vector<1x128xf32>, vector<1x128xf32>, vector<1x128xf32>, vector<1x128xf32> -> vector<4x128xf32>
    %75 = tpu.concatenate %17, %34, %51, %68 in 0 : vector<1x128xf32>, vector<1x128xf32>, vector<1x128xf32>, vector<1x128xf32> -> vector<4x128xf32>
    %76 = tpu.concatenate %22, %39, %56, %73 in 0 : vector<1x128xf32>, vector<1x128xf32>, vector<1x128xf32>, vector<1x128xf32> -> vector<4x128xf32>
    %c0_76 = arith.constant 0 : index
    %c0_77 = arith.constant 0 : index
    %c0_78 = arith.constant 0 : index
    %77 = vector.load %arg4[%c0_76, %c0_77, %c0_78] : memref<15x4x128xf32, #tpu.memory_space<vmem>>, vector<15x4x128xf32>
    %c0_79 = arith.constant 0 : index
    %c0_80 = arith.constant 0 : index
    %78 = vector.load %arg3[%c0_79, %c0_80] : memref<1x128xf32, #tpu.memory_space<vmem>>, vector<1x128xf32>
    %79 = vector.shape_cast %78 : vector<1x128xf32> to vector<1x128xf32>
    %80 = vector.broadcast %79 : vector<1x128xf32> to vector<4x128xf32>
    %81 = vector.extract_strided_slice %77 {offsets = [0, 0, 0], sizes = [1, 4, 128], strides = [1, 1, 1]} : vector<15x4x128xf32> to vector<1x4x128xf32>
    %82 = vector.shape_cast %81 : vector<1x4x128xf32> to vector<4x128xf32>
    %83 = arith.mulf %82, %1 : vector<4x128xf32>
    %84 = arith.addf %74, %83 : vector<4x128xf32>
    %85 = vector.extract_strided_slice %77 {offsets = [3, 0, 0], sizes = [1, 4, 128], strides = [1, 1, 1]} : vector<15x4x128xf32> to vector<1x4x128xf32>
    %86 = vector.shape_cast %85 : vector<1x4x128xf32> to vector<4x128xf32>
    %87 = arith.addf %84, %86 : vector<4x128xf32>
    %88 = vector.extract_strided_slice %77 {offsets = [1, 0, 0], sizes = [1, 4, 128], strides = [1, 1, 1]} : vector<15x4x128xf32> to vector<1x4x128xf32>
    %89 = vector.shape_cast %88 : vector<1x4x128xf32> to vector<4x128xf32>
    %90 = arith.mulf %89, %1 : vector<4x128xf32>
    %91 = arith.addf %75, %90 : vector<4x128xf32>
    %92 = vector.extract_strided_slice %77 {offsets = [4, 0, 0], sizes = [1, 4, 128], strides = [1, 1, 1]} : vector<15x4x128xf32> to vector<1x4x128xf32>
    %93 = vector.shape_cast %92 : vector<1x4x128xf32> to vector<4x128xf32>
    %94 = arith.addf %91, %93 : vector<4x128xf32>
    %95 = vector.extract_strided_slice %77 {offsets = [2, 0, 0], sizes = [1, 4, 128], strides = [1, 1, 1]} : vector<15x4x128xf32> to vector<1x4x128xf32>
    %96 = vector.shape_cast %95 : vector<1x4x128xf32> to vector<4x128xf32>
    %97 = arith.mulf %96, %1 : vector<4x128xf32>
    %98 = arith.addf %76, %97 : vector<4x128xf32>
    %99 = vector.extract_strided_slice %77 {offsets = [5, 0, 0], sizes = [1, 4, 128], strides = [1, 1, 1]} : vector<15x4x128xf32> to vector<1x4x128xf32>
    %100 = vector.shape_cast %99 : vector<1x4x128xf32> to vector<4x128xf32>
    %101 = arith.addf %98, %100 : vector<4x128xf32>
    %102 = vector.extract_strided_slice %77 {offsets = [6, 0, 0], sizes = [1, 4, 128], strides = [1, 1, 1]} : vector<15x4x128xf32> to vector<1x4x128xf32>
    %103 = vector.shape_cast %102 : vector<1x4x128xf32> to vector<4x128xf32>
    %104 = arith.mulf %103, %5 : vector<4x128xf32>
    %105 = arith.negf %104 : vector<4x128xf32>
    %106 = math.exp %105 : vector<4x128xf32>
    %cst_81 = arith.constant 1.000000e+00 : f32
    %107 = vector.broadcast %cst_81 : f32 to vector<4x128xf32>
    %108 = arith.addf %107, %106 : vector<4x128xf32>
    %109 = arith.divf %107, %108 : vector<4x128xf32>
    %110 = vector.extract_strided_slice %77 {offsets = [7, 0, 0], sizes = [1, 4, 128], strides = [1, 1, 1]} : vector<15x4x128xf32> to vector<1x4x128xf32>
    %111 = vector.shape_cast %110 : vector<1x4x128xf32> to vector<4x128xf32>
    %112 = arith.mulf %111, %5 : vector<4x128xf32>
    %113 = arith.negf %112 : vector<4x128xf32>
    %114 = math.exp %113 : vector<4x128xf32>
    %cst_82 = arith.constant 1.000000e+00 : f32
    %115 = vector.broadcast %cst_82 : f32 to vector<4x128xf32>
    %116 = arith.addf %115, %114 : vector<4x128xf32>
    %117 = arith.divf %115, %116 : vector<4x128xf32>
    %118 = vector.extract_strided_slice %77 {offsets = [8, 0, 0], sizes = [1, 4, 128], strides = [1, 1, 1]} : vector<15x4x128xf32> to vector<1x4x128xf32>
    %119 = vector.shape_cast %118 : vector<1x4x128xf32> to vector<4x128xf32>
    %120 = arith.mulf %119, %5 : vector<4x128xf32>
    %121 = vector.extract_strided_slice %77 {offsets = [9, 0, 0], sizes = [1, 4, 128], strides = [1, 1, 1]} : vector<15x4x128xf32> to vector<1x4x128xf32>
    %122 = vector.shape_cast %121 : vector<1x4x128xf32> to vector<4x128xf32>
    %123 = arith.mulf %122, %1 : vector<4x128xf32>
    %124 = vector.extract_strided_slice %77 {offsets = [11, 0, 0], sizes = [1, 4, 128], strides = [1, 1, 1]} : vector<15x4x128xf32> to vector<1x4x128xf32>
    %125 = vector.shape_cast %124 : vector<1x4x128xf32> to vector<4x128xf32>
    %126 = arith.addf %123, %125 : vector<4x128xf32>
    %127 = arith.addf %126, %109 : vector<4x128xf32>
    %128 = arith.negf %127 : vector<4x128xf32>
    %129 = math.exp %128 : vector<4x128xf32>
    %cst_83 = arith.constant 1.000000e+00 : f32
    %130 = vector.broadcast %cst_83 : f32 to vector<4x128xf32>
    %131 = arith.addf %130, %129 : vector<4x128xf32>
    %132 = arith.divf %130, %131 : vector<4x128xf32>
    %133 = vector.extract_strided_slice %77 {offsets = [10, 0, 0], sizes = [1, 4, 128], strides = [1, 1, 1]} : vector<15x4x128xf32> to vector<1x4x128xf32>
    %134 = vector.shape_cast %133 : vector<1x4x128xf32> to vector<4x128xf32>
    %135 = arith.mulf %134, %1 : vector<4x128xf32>
    %136 = vector.extract_strided_slice %77 {offsets = [12, 0, 0], sizes = [1, 4, 128], strides = [1, 1, 1]} : vector<15x4x128xf32> to vector<1x4x128xf32>
    %137 = vector.shape_cast %136 : vector<1x4x128xf32> to vector<4x128xf32>
    %138 = arith.addf %135, %137 : vector<4x128xf32>
    %139 = arith.addf %138, %117 : vector<4x128xf32>
    %140 = arith.negf %139 : vector<4x128xf32>
    %141 = math.exp %140 : vector<4x128xf32>
    %cst_84 = arith.constant 1.000000e+00 : f32
    %142 = vector.broadcast %cst_84 : f32 to vector<4x128xf32>
    %143 = arith.addf %142, %141 : vector<4x128xf32>
    %144 = arith.divf %142, %143 : vector<4x128xf32>
    %145 = vector.extract_strided_slice %77 {offsets = [13, 0, 0], sizes = [1, 4, 128], strides = [1, 1, 1]} : vector<15x4x128xf32> to vector<1x4x128xf32>
    %146 = vector.shape_cast %145 : vector<1x4x128xf32> to vector<4x128xf32>
    %147 = arith.mulf %146, %80 : vector<4x128xf32>
    %148 = arith.addf %87, %147 : vector<4x128xf32>
    %149 = arith.negf %148 : vector<4x128xf32>
    %150 = math.exp %149 : vector<4x128xf32>
    %cst_85 = arith.constant 1.000000e+00 : f32
    %151 = vector.broadcast %cst_85 : f32 to vector<4x128xf32>
    %152 = arith.addf %151, %150 : vector<4x128xf32>
    %153 = arith.divf %151, %152 : vector<4x128xf32>
    %154 = math.tanh %101 : vector<4x128xf32>
    %155 = arith.mulf %153, %132 : vector<4x128xf32>
    %cst_86 = arith.constant 1.000000e+00 : f32
    %156 = vector.broadcast %cst_86 : f32 to vector<4x128xf32>
    %157 = arith.subf %156, %155 : vector<4x128xf32>
    %158 = arith.mulf %157, %80 : vector<4x128xf32>
    %159 = arith.mulf %153, %132 : vector<4x128xf32>
    %160 = arith.mulf %159, %154 : vector<4x128xf32>
    %161 = arith.addf %158, %160 : vector<4x128xf32>
    %cst_87 = arith.constant 1.000000e+00 : f32
    %162 = vector.broadcast %cst_87 : f32 to vector<4x128xf32>
    %163 = arith.subf %162, %153 : vector<4x128xf32>
    %164 = arith.mulf %163, %80 : vector<4x128xf32>
    %165 = arith.mulf %153, %144 : vector<4x128xf32>
    %166 = arith.mulf %165, %154 : vector<4x128xf32>
    %167 = arith.addf %164, %166 : vector<4x128xf32>
    %168 = vector.extract_strided_slice %77 {offsets = [14, 0, 0], sizes = [1, 4, 128], strides = [1, 1, 1]} : vector<15x4x128xf32> to vector<1x4x128xf32>
    %169 = vector.shape_cast %168 : vector<1x4x128xf32> to vector<4x128xf32>
    %170 = arith.mulf %169, %161 : vector<4x128xf32>
    %171 = arith.addf %94, %170 : vector<4x128xf32>
    %172 = arith.addf %171, %120 : vector<4x128xf32>
    %173 = arith.negf %172 : vector<4x128xf32>
    %174 = math.exp %173 : vector<4x128xf32>
    %cst_88 = arith.constant 1.000000e+00 : f32
    %175 = vector.broadcast %cst_88 : f32 to vector<4x128xf32>
    %176 = arith.addf %175, %174 : vector<4x128xf32>
    %177 = arith.divf %175, %176 : vector<4x128xf32>
    %178 = math.tanh %161 : vector<4x128xf32>
    %179 = arith.mulf %177, %178 : vector<4x128xf32>
    %180 = arith.mulf %3, %179 : vector<4x128xf32>
    %c0_89 = arith.constant 0 : index
    %c0_90 = arith.constant 0 : index
    %181 = vector.load %arg11[%c0_89, %c0_90] : memref<4x128xf32, #tpu.memory_space<vmem>>, vector<4x128xf32>
    tpu.vector_store %arg11[%c0_89, %c0_90], %180 {strides = array<i32>} : memref<4x128xf32, #tpu.memory_space<vmem>>, vector<4x128xf32>,
    %c0_i32 = arith.constant 0 : i32
    %182 = arith.cmpi eq, %arg0, %c0_i32 : i32
    %183 = arith.extui %182 : i1 to i32
    %c0_i32_91 = arith.constant 0 : i32
    %184 = arith.cmpi ne, %183, %c0_i32_91 : i32
    scf.if %184 {
      %cst_109 = arith.constant 0.000000e+00 : f32
      %205 = vector.broadcast %cst_109 : f32 to vector<3x128xf32>
      %c0_110 = arith.constant 0 : index
      %c0_111 = arith.constant 0 : index
      %206 = vector.load %arg14[%c0_110, %c0_111] : memref<3x128xf32, #tpu.memory_space<vmem>>, vector<3x128xf32>
      tpu.vector_store %arg14[%c0_110, %c0_111], %205 {strides = array<i32>} : memref<3x128xf32, #tpu.memory_space<vmem>>, vector<3x128xf32>,
    } else {
    }
    %c0_92 = arith.constant 0 : index
    %c0_93 = arith.constant 0 : index
    %185 = vector.load %arg14[%c0_92, %c0_93] : memref<3x128xf32, #tpu.memory_space<vmem>>, vector<1x128xf32>
    %186 = arith.mulf %3, %167 : vector<4x128xf32>
    %cst_94 = arith.constant dense<0.000000e+00> : vector<128xf32>
    %187 = vector.multi_reduction <add>, %186, %cst_94 [0] : vector<4x128xf32> to vector<128xf32>
    %188 = vector.shape_cast %187 : vector<128xf32> to vector<1x128xf32>
    %189 = arith.addf %185, %188 : vector<1x128xf32>
    %c0_95 = arith.constant 0 : index
    %c0_96 = arith.constant 0 : index
    %190 = vector.load %arg14[%c0_95, %c0_96] : memref<3x128xf32, #tpu.memory_space<vmem>>, vector<1x128xf32>
    tpu.vector_store %arg14[%c0_95, %c0_96], %189 {strides = array<i32>} : memref<3x128xf32, #tpu.memory_space<vmem>>, vector<1x128xf32>,
    %c1_97 = arith.constant 1 : index
    %c0_98 = arith.constant 0 : index
    %191 = vector.load %arg14[%c1_97, %c0_98] : memref<3x128xf32, #tpu.memory_space<vmem>>, vector<1x128xf32>
    %192 = arith.mulf %3, %179 : vector<4x128xf32>
    %cst_99 = arith.constant dense<0.000000e+00> : vector<128xf32>
    %193 = vector.multi_reduction <add>, %192, %cst_99 [0] : vector<4x128xf32> to vector<128xf32>
    %194 = vector.shape_cast %193 : vector<128xf32> to vector<1x128xf32>
    %195 = arith.addf %191, %194 : vector<1x128xf32>
    %c1_100 = arith.constant 1 : index
    %c0_101 = arith.constant 0 : index
    %196 = vector.load %arg14[%c1_100, %c0_101] : memref<3x128xf32, #tpu.memory_space<vmem>>, vector<1x128xf32>
    tpu.vector_store %arg14[%c1_100, %c0_101], %195 {strides = array<i32>} : memref<3x128xf32, #tpu.memory_space<vmem>>, vector<1x128xf32>,
    %c2_102 = arith.constant 2 : index
    %c0_103 = arith.constant 0 : index
    %197 = vector.load %arg14[%c2_102, %c0_103] : memref<3x128xf32, #tpu.memory_space<vmem>>, vector<1x128xf32>
    %cst_104 = arith.constant dense<0.000000e+00> : vector<128xf32>
    %198 = vector.multi_reduction <add>, %3, %cst_104 [0] : vector<4x128xf32> to vector<128xf32>
    %199 = vector.shape_cast %198 : vector<128xf32> to vector<1x128xf32>
    %200 = arith.addf %197, %199 : vector<1x128xf32>
    %c2_105 = arith.constant 2 : index
    %c0_106 = arith.constant 0 : index
    %201 = vector.load %arg14[%c2_105, %c0_106] : memref<3x128xf32, #tpu.memory_space<vmem>>, vector<1x128xf32>
    tpu.vector_store %arg14[%c2_105, %c0_106], %200 {strides = array<i32>} : memref<3x128xf32, #tpu.memory_space<vmem>>, vector<1x128xf32>,
    %c0_i32_107 = arith.constant 0 : i32
    %202 = arith.cmpi eq, %arg0, %c0_i32_107 : i32
    %203 = arith.extui %202 : i1 to i32
    %c0_i32_108 = arith.constant 0 : i32
    %204 = arith.cmpi ne, %203, %c0_i32_108 : i32
    scf.if %204 {
      %c0_109 = arith.constant 0 : index
      %c0_110 = arith.constant 0 : index
      %205 = vector.load %arg14[%c0_109, %c0_110] : memref<3x128xf32, #tpu.memory_space<vmem>>, vector<1x128xf32>
      %c1_111 = arith.constant 1 : index
      %c0_112 = arith.constant 0 : index
      %206 = vector.load %arg14[%c1_111, %c0_112] : memref<3x128xf32, #tpu.memory_space<vmem>>, vector<1x128xf32>
      %c2_113 = arith.constant 2 : index
      %c0_114 = arith.constant 0 : index
      %207 = vector.load %arg14[%c2_113, %c0_114] : memref<3x128xf32, #tpu.memory_space<vmem>>, vector<1x128xf32>
      %cst_115 = arith.constant dense<0.000000e+00> : vector<1xf32>
      %208 = vector.multi_reduction <add>, %207, %cst_115 [1] : vector<1x128xf32> to vector<1xf32>
      %209 = vector.shape_cast %208 : vector<1xf32> to vector<1x1xf32>
      %cst_116 = arith.constant 3.125000e-02 : f32
      %210 = vector.broadcast %cst_116 : f32 to vector<1x1xf32>
      %211 = arith.mulf %209, %210 : vector<1x1xf32>
      %cst_117 = arith.constant 1.000000e+00 : f32
      %212 = vector.broadcast %cst_117 : f32 to vector<1x1xf32>
      %213 = arith.divf %212, %211 : vector<1x1xf32>
      %c0_118 = arith.constant 0 : index
      %c0_119 = arith.constant 0 : index
      %214 = vector.load %arg6[%c0_118, %c0_119] : memref<64x128xf32, #tpu.memory_space<vmem>>, vector<64x128xf32>
      %215 = vector.broadcast %205 : vector<1x128xf32> to vector<64x128xf32>
      %216 = arith.mulf %214, %215 : vector<64x128xf32>
      %cst_120 = arith.constant dense<0.000000e+00> : vector<64xf32>
      %217 = vector.multi_reduction <add>, %216, %cst_120 [1] : vector<64x128xf32> to vector<64xf32>
      %218 = vector.shape_cast %217 : vector<64xf32> to vector<64x1xf32>
      %c0_121 = arith.constant 0 : index
      %c0_122 = arith.constant 0 : index
      %219 = vector.load %arg7[%c0_121, %c0_122] : memref<64x128xf32, #tpu.memory_space<vmem>>, vector<64x128xf32>
      %220 = vector.broadcast %206 : vector<1x128xf32> to vector<64x128xf32>
      %221 = arith.mulf %219, %220 : vector<64x128xf32>
      %cst_123 = arith.constant dense<0.000000e+00> : vector<64xf32>
      %222 = vector.multi_reduction <add>, %221, %cst_123 [1] : vector<64x128xf32> to vector<64xf32>
      %223 = vector.shape_cast %222 : vector<64xf32> to vector<64x1xf32>
      %224 = arith.addf %218, %223 : vector<64x1xf32>
      %225 = vector.broadcast %213 : vector<1x1xf32> to vector<64x1xf32>
      %226 = arith.mulf %224, %225 : vector<64x1xf32>
      %c0_124 = arith.constant 0 : index
      %c0_125 = arith.constant 0 : index
      %227 = vector.load %arg8[%c0_124, %c0_125] : memref<64x1xf32, #tpu.memory_space<vmem>>, vector<64x1xf32>
      %228 = arith.addf %226, %227 : vector<64x1xf32>
      %cst_126 = arith.constant 0.000000e+00 : f32
      %229 = vector.broadcast %cst_126 : f32 to vector<64x1xf32>
      %230 = arith.maximumf %228, %229 : vector<64x1xf32>
      %c0_127 = arith.constant 0 : index
      %c0_128 = arith.constant 0 : index
      %231 = vector.load %arg9[%c0_127, %c0_128] : memref<64x4xf32, #tpu.memory_space<vmem>>, vector<64x4xf32>
      %232 = vector.broadcast %230 : vector<64x1xf32> to vector<64x4xf32>
      %233 = arith.mulf %232, %231 : vector<64x4xf32>
      %cst_129 = arith.constant dense<0.000000e+00> : vector<4xf32>
      %234 = vector.multi_reduction <add>, %233, %cst_129 [0] : vector<64x4xf32> to vector<4xf32>
      %235 = vector.shape_cast %234 : vector<4xf32> to vector<1x4xf32>
      %c0_130 = arith.constant 0 : index
      %c0_131 = arith.constant 0 : index
      %236 = vector.load %arg10[%c0_130, %c0_131] : memref<1x4xf32, #tpu.memory_space<vmem>>, vector<1x4xf32>
      %237 = arith.addf %235, %236 : vector<1x4xf32>
      %cst_132 = arith.constant dense<0xFF800000> : vector<1xf32>
      %238 = vector.multi_reduction <maximumf>, %237, %cst_132 [1] : vector<1x4xf32> to vector<1xf32>
      %239 = vector.shape_cast %238 : vector<1xf32> to vector<1x1xf32>
      %240 = vector.broadcast %239 : vector<1x1xf32> to vector<1x4xf32>
      %241 = arith.subf %237, %240 : vector<1x4xf32>
      %242 = math.exp %241 : vector<1x4xf32>
      %cst_133 = arith.constant dense<0.000000e+00> : vector<1xf32>
      %243 = vector.multi_reduction <add>, %242, %cst_133 [1] : vector<1x4xf32> to vector<1xf32>
      %244 = vector.shape_cast %243 : vector<1xf32> to vector<1x1xf32>
      %245 = vector.broadcast %244 : vector<1x1xf32> to vector<1x4xf32>
      %246 = arith.divf %242, %245 : vector<1x4xf32>
      %c0_134 = arith.constant 0 : index
      %c0_135 = arith.constant 0 : index
      %247 = vector.load %arg12[%c0_134, %c0_135] : memref<1x4xf32, #tpu.memory_space<vmem>>, vector<1x4xf32>
      tpu.vector_store %arg12[%c0_134, %c0_135], %246 {strides = array<i32>} : memref<1x4xf32, #tpu.memory_space<vmem>>, vector<1x4xf32>,
      %c32_i32 = arith.constant 32 : i32
      %248 = tpu.dynamic_rotate %205 by %c32_i32 dim 1 : vector<1x128xf32>, i32 -> vector<1x128xf32>
      %249 = arith.addf %205, %248 : vector<1x128xf32>
      %c64_i32 = arith.constant 64 : i32
      %250 = tpu.dynamic_rotate %205 by %c64_i32 dim 1 : vector<1x128xf32>, i32 -> vector<1x128xf32>
      %251 = arith.addf %249, %250 : vector<1x128xf32>
      %c96_i32 = arith.constant 96 : i32
      %252 = tpu.dynamic_rotate %205 by %c96_i32 dim 1 : vector<1x128xf32>, i32 -> vector<1x128xf32>
      %253 = arith.addf %251, %252 : vector<1x128xf32>
      %254 = vector.extract_strided_slice %253 {offsets = [0, 0], sizes = [1, 32], strides = [1, 1]} : vector<1x128xf32> to vector<1x32xf32>
      %255 = vector.broadcast %213 : vector<1x1xf32> to vector<1x32xf32>
      %256 = arith.mulf %254, %255 : vector<1x32xf32>
      %c0_136 = arith.constant 0 : index
      %c0_137 = arith.constant 0 : index
      %257 = vector.load %arg13[%c0_136, %c0_137] : memref<1x32xf32, #tpu.memory_space<vmem>>, vector<1x32xf32>
      tpu.vector_store %arg13[%c0_136, %c0_137], %256 {strides = array<i32>} : memref<1x32xf32, #tpu.memory_space<vmem>>, vector<1x32xf32>,
    } else {
    }
    return
  }
  func.func @transform_0(%arg0: i32) -> (i32, i32, i32) {
    %c0_i32 = arith.constant 0 : i32
    %c0_i32_0 = arith.constant 0 : i32
    %c0_i32_1 = arith.constant 0 : i32
    return %c0_i32, %arg0, %c0_i32_0 : i32, i32, i32
  }
  func.func @transform_1(%arg0: i32) -> (i32, i32, i32) {
    %c0_i32 = arith.constant 0 : i32
    %c0_i32_0 = arith.constant 0 : i32
    %c0_i32_1 = arith.constant 0 : i32
    return %arg0, %c0_i32, %c0_i32_0 : i32, i32, i32
  }
  func.func @transform_2(%arg0: i32) -> (i32, i32) {
    %c0_i32 = arith.constant 0 : i32
    %c0_i32_0 = arith.constant 0 : i32
    %c0_i32_1 = arith.constant 0 : i32
    return %c0_i32, %c0_i32_0 : i32, i32
  }
  func.func @transform_3(%arg0: i32) -> (i32, i32, i32) {
    %c0_i32 = arith.constant 0 : i32
    %c0_i32_0 = arith.constant 0 : i32
    %c0_i32_1 = arith.constant 0 : i32
    return %c0_i32, %arg0, %c0_i32_0 : i32, i32, i32
  }
  func.func @transform_4(%arg0: i32) -> (i32, i32, i32, i32) {
    %c0_i32 = arith.constant 0 : i32
    %c0_i32_0 = arith.constant 0 : i32
    %c0_i32_1 = arith.constant 0 : i32
    %c0_i32_2 = arith.constant 0 : i32
    return %c0_i32, %arg0, %c0_i32_0, %c0_i32_1 : i32, i32, i32, i32
  }
  func.func @transform_5(%arg0: i32) -> (i32, i32) {
    %c0_i32 = arith.constant 0 : i32
    %c0_i32_0 = arith.constant 0 : i32
    %c0_i32_1 = arith.constant 0 : i32
    return %c0_i32, %c0_i32_0 : i32, i32
  }
  func.func @transform_6(%arg0: i32) -> (i32, i32) {
    %c0_i32 = arith.constant 0 : i32
    %c0_i32_0 = arith.constant 0 : i32
    %c0_i32_1 = arith.constant 0 : i32
    return %c0_i32, %c0_i32_0 : i32, i32
  }
  func.func @transform_7(%arg0: i32) -> (i32, i32) {
    %c0_i32 = arith.constant 0 : i32
    %c0_i32_0 = arith.constant 0 : i32
    %c0_i32_1 = arith.constant 0 : i32
    return %c0_i32, %c0_i32_0 : i32, i32
  }
  func.func @transform_8(%arg0: i32) -> (i32, i32) {
    %c0_i32 = arith.constant 0 : i32
    %c0_i32_0 = arith.constant 0 : i32
    %c0_i32_1 = arith.constant 0 : i32
    return %c0_i32, %c0_i32_0 : i32, i32
  }
  func.func @transform_9(%arg0: i32) -> (i32, i32) {
    %c0_i32 = arith.constant 0 : i32
    %c0_i32_0 = arith.constant 0 : i32
    %c0_i32_1 = arith.constant 0 : i32
    return %c0_i32, %c0_i32_0 : i32, i32
  }
  func.func @transform_10(%arg0: i32) -> (i32, i32) {
    %c0_i32 = arith.constant 0 : i32
    %c0_i32_0 = arith.constant 0 : i32
    return %arg0, %c0_i32 : i32, i32
  }
  func.func @transform_11(%arg0: i32) -> (i32, i32) {
    %c0_i32 = arith.constant 0 : i32
    %c0_i32_0 = arith.constant 0 : i32
    %c0_i32_1 = arith.constant 0 : i32
    return %c0_i32, %c0_i32_0 : i32, i32
  }
  func.func @transform_12(%arg0: i32) -> (i32, i32) {
    %c0_i32 = arith.constant 0 : i32
    %c0_i32_0 = arith.constant 0 : i32
    %c0_i32_1 = arith.constant 0 : i32
    return %c0_i32, %c0_i32_0 : i32, i32
  }
}

</mosaic_0001>

<bundles_post_ra>
// kernel: packet_time_lstm_forward.1
= control target key start
LH: loop header
LB: loop body
LE: loop exit
PB: predicated region body
PF: predicated region fallthrough
CT: control target
= control target key end

     0   :  { %18 = vsyncpa [#allocation4], 0  ;;  %s1593_s0 = inlined_call_operand.vmem [shape: f32[3,4,128], index: 0, kind: input, shape index: {}]   ;;  %s1594_s1 = inlined_call_operand.vmem [shape: f32[4,32,128], index: 1, kind: input, shape index: {}]   ;;  %s1595_s2 = inlined_call_operand.vmem [shape: f32[1,128], index: 2, kind: input, shape index: {}]   ;;  %s1596_s3 = inlined_call_operand.vmem [shape: f32[15,4,128], index: 3, kind: input, shape index: {}]   ;;  %s1597_s4 = inlined_call_operand.vmem [shape: f32[3,4,32,128], index: 4, kind: input, shape index: {}]   ;;  %s1598_s5 = inlined_call_operand.vmem [shape: f32[64,128], index: 5, kind: input, shape index: {}]   ;;  %s1599_s6 = inlined_call_operand.vmem [shape: f32[64,128], index: 6, kind: input, shape index: {}]   ;;  %s1600_s7 = inlined_call_operand.vmem [shape: f32[64,1], index: 7, kind: input, shape index: {}]   ;;  %s1601_s8 = inlined_call_operand.vmem [shape: f32[64,4], index: 8, kind: input, shape index: {}]   ;;  %s1602_s9 = inlined_call_operand.vmem [shape: f32[1,4], index: 9, kind: input, shape index: {}]   ;;  %s1603_s10 = inlined_call_operand.vmem [shape: f32[4,128], index: 10, kind: output, shape index: {0}]   ;;  %s1604_s11 = inlined_call_operand.hbm [shape: f32[1,4], index: 11, kind: output, shape index: {1}]   ;;  %s1605_s12 = inlined_call_operand.hbm [shape: f32[1,32], index: 12, kind: output, shape index: {2}]  }
   0x1   :  { %v1023_v0 = vld [vmem:[%s1594_s1] sm:$0xff]  ;;  %v1028_v1 = vld [vmem:[%s1594_s1 + $0x8] sm:$0xff]  ;;  %v1039_v4 = vld [vmem:[%s1594_s1 + $0x10] sm:$0xff] }
   0x2   :  { %v49_v2 = vld [vmem:[%s1597_s4] sm:$0xff]  ;;  %v50_v3 = vld [vmem:[%s1597_s4 + $0x8] sm:$0xff]  ;;  %v51_v5 = vld [vmem:[%s1597_s4 + $0x10] sm:$0xff] }
   0x3   :  { %v53_v6 = vmul.f32 %v49_v2, %v1023_v0  ;;  %v54_v7 = vmul.f32 %v50_v3, %v1028_v1  ;;  %v1049_v8 = vld [vmem:[%s1594_s1 + $0x18] sm:$0xff]  ;;  %v55_v10 = vmul.f32 %v51_v5, %v1039_v4  ;;  %v1058_v12 = vld [vmem:[%s1594_s1 + $0x20] sm:$0xff]  ;;  %v1063_v13 = vld [vmem:[%s1594_s1 + $0x28] sm:$0xff] }
   0x4   :  { %v52_v9 = vld [vmem:[%s1597_s4 + $0x18] sm:$0xff]  ;;  %v1068_v14 = vld [vmem:[%s1594_s1 + $0x30] sm:$0xff]  ;;  %v799_v16 = vld [vmem:[%s1597_s4 + $0x20] sm:$0xff] }
   0x5   :  { %v57_v11 = vadd.f32 %v54_v7, %v53_v6  ;;  %v1073_v15 = vld [vmem:[%s1594_s1 + $0x38] sm:$0xff]  ;;  %v800_v17 = vld [vmem:[%s1597_s4 + $0x28] sm:$0xff]  ;;  %v801_v18 = vld [vmem:[%s1597_s4 + $0x30] sm:$0xff]  ;;  %v112_v20 = vmul.f32 %v799_v16, %v1058_v12  ;;  %v56_v23 = vmul.f32 %v52_v9, %v1049_v8 }
   0x6   :  { %v802_v19 = vld [vmem:[%s1597_s4 + $0x38] sm:$0xff]  ;;  %v113_v21 = vmul.f32 %v800_v17, %v1063_v13  ;;  %v114_v22 = vmul.f32 %v801_v18, %v1068_v14  ;;  %v1095_v28 = vld [vmem:[%s1594_s1 + $0x40] sm:$0xff]  ;;  %v1100_v29 = vld [vmem:[%s1594_s1 + $0x48] sm:$0xff] }
   0x7   :  { %v58_v24 = vadd.f32 %v57_v11, %v55_v10  ;;  %v115_v25 = vmul.f32 %v802_v19, %v1073_v15  ;;  %v815_v30 = vld [vmem:[%s1597_s4 + $0x40] sm:$0xff]  ;;  %v816_v31 = vld [vmem:[%s1597_s4 + $0x48] sm:$0xff]  ;;  %v1111_v34 = vld [vmem:[%s1594_s1 + $0x50] sm:$0xff] }
   0x8   :  { %v116_v26 = vadd.f32 %v113_v21, %v112_v20  ;;  %v817_v35 = vld [vmem:[%s1597_s4 + $0x50] sm:$0xff]  ;;  %v171_v36 = vmul.f32 %v815_v30, %v1095_v28  ;;  %v172_v37 = vmul.f32 %v816_v31, %v1100_v29  ;;  %v1121_v38 = vld [vmem:[%s1594_s1 + $0x58] sm:$0xff]  ;;  %v791_v40 = vld [vmem:[%s1597_s4 + $0x100] sm:$0xff] }
   0x9   :  { %v59_v32 = vadd.f32 %v58_v24, %v56_v23  ;;  %v818_v39 = vld [vmem:[%s1597_s4 + $0x58] sm:$0xff]  ;;  %v792_v41 = vld [vmem:[%s1597_s4 + $0x108] sm:$0xff]  ;;  %v173_v42 = vmul.f32 %v817_v35, %v1111_v34  ;;  %v89_v47 = vmul.f32 %v791_v40, %v1023_v0  ;;  %v793_v49 = vld [vmem:[%s1597_s4 + $0x110] sm:$0xff] }
   0xa   :  { %v117_v27 = vadd.f32 %v116_v26, %v114_v22  ;;  %v174_v45 = vmul.f32 %v818_v39, %v1121_v38  ;;  %v175_v46 = vadd.f32 %v172_v37, %v171_v36  ;;  %v90_v48 = vmul.f32 %v792_v41, %v1028_v1  ;;  %v807_v53 = vld [vmem:[%s1597_s4 + $0x120] sm:$0xff]  ;;  %v808_v54 = vld [vmem:[%s1597_s4 + $0x128] sm:$0xff]  ;;  %v794_v58 = vld [vmem:[%s1597_s4 + $0x118] sm:$0xff] }
   0xb   :  { %v60_v43 = vrot.slane %v59_v32, 4  ;;  %v787_v55 = vld [vmem:[%s1597_s4 + $0x80] sm:$0xff]  ;;  %v788_v57 = vld [vmem:[%s1597_s4 + $0x88] sm:$0xff]  ;;  %v91_v59 = vmul.f32 %v793_v49, %v1039_v4  ;;  %v148_v62 = vmul.f32 %v807_v53, %v1058_v12  ;;  %v149_v63 = vmul.f32 %v808_v54, %v1063_v13  ;;  %v809_v10 = vld [vmem:[%s1597_s4 + $0x130] sm:$0xff] }
   0xc   :  { %v118_v33 = vadd.f32 %v117_v27, %v115_v25  ;;  %v176_v50 = vadd.f32 %v175_v46, %v173_v42  ;;  %v93_v60 = vadd.f32 %v90_v48, %v89_v47  ;;  %v1158_v61 = vld [vmem:[%s1594_s1 + $0x60] sm:$0xff]  ;;  %v1165_v3 = vld [vmem:[%s1594_s1 + $0x68] sm:$0xff]  ;;  %v1179_v11 = vld [vmem:[%s1594_s1 + $0x70] sm:$0xff]  ;;  %v71_v17 = vmul.f32 %v787_v55, %v1023_v0 }
   0xd   :  { %v61_v51 = vadd.f32 %v60_v43, %v59_v32  ;;  %v831_v5 = vld [vmem:[%s1597_s4 + $0x60] sm:$0xff]  ;;  %v832_v6 = vld [vmem:[%s1597_s4 + $0x68] sm:$0xff]  ;;  %v833_v16 = vld [vmem:[%s1597_s4 + $0x70] sm:$0xff]  ;;  %v72_v18 = vmul.f32 %v788_v57, %v1028_v1  ;;  %v92_v23 = vmul.f32 %v794_v58, %v1049_v8  ;;  %v150_v27 = vmul.f32 %v809_v10, %v1068_v14 }
   0xe   :  { %v119_v44 = vrot.slane %v118_v33, 4  ;;  %v177_v56 = vadd.f32 %v176_v50, %v174_v45  ;;  %v1189_v20 = vld [vmem:[%s1594_s1 + $0x78] sm:$0xff]  ;;  %v789_v22 = vld [vmem:[%s1597_s4 + $0x90] sm:$0xff]  ;;  %v94_v24 = vadd.f32 %v93_v60, %v91_v59  ;;  %v230_v0 = vmul.f32 %v831_v5, %v1158_v61  ;;  %v803_v25 = vld [vmem:[%s1597_s4 + $0xa0] sm:$0xff] }
   0xf   :  { %v62_v7 = vrot.slane %v61_v51, 2  ;;  %v834_v21 = vld [vmem:[%s1597_s4 + $0x78] sm:$0xff]  ;;  %v231_v1 = vmul.f32 %v832_v6, %v1165_v3  ;;  %v804_v26 = vld [vmem:[%s1597_s4 + $0xa8] sm:$0xff]  ;;  %v152_v30 = vadd.f32 %v149_v63, %v148_v62  ;;  %v232_v32 = vmul.f32 %v833_v16, %v1179_v11 }
  0x10   :  { %v120_v52 = vadd.f32 %v119_v44, %v118_v33  ;;  %v178_v2 = vrot.slane %v177_v56, 4 }
  0x12   :  { %v121_v9 = vrot.slane %v120_v52, 2  ;;  %v179_v19 = vadd.f32 %v178_v2, %v177_v56 }
  0x14   :  { %v180_v31 = vrot.slane %v179_v19, 2 }
  0x15   :  { %19 = vsyncpa [#allocation6], 0  ;;  %v63_v33 = vadd.f32 %v62_v7, %v61_v51  ;;  %v122_v35 = vadd.f32 %v121_v9, %v120_v52  ;;  %v810_v36 = vld [vmem:[%s1597_s4 + $0x138] sm:$0xff]  ;;  %v233_v37 = vmul.f32 %v834_v21, %v1189_v20  ;;  %v234_v39 = vadd.f32 %v231_v1, %v230_v0  ;;  %v805_v41 = vld [vmem:[%s1597_s4 + $0xb0] sm:$0xff]  ;;  %s950_s15 = smov 32   ;;  %s952_s16 = smov 96  }
  0x16   :  { %v73_v40 = vmul.f32 %v789_v22, %v1039_v4  ;;  %v130_v42 = vmul.f32 %v803_v25, %v1058_v12  ;;  %v131_v43 = vmul.f32 %v804_v26, %v1063_v13  ;;  %v823_v44 = vld [vmem:[%s1597_s4 + $0x140] sm:$0xff]  ;;  %v824_v45 = vld [vmem:[%s1597_s4 + $0x148] sm:$0xff]  ;;  %v75_v47 = vadd.f32 %v72_v18, %v71_v17  ;;  %v790_v51 = vld [vmem:[%s1597_s4 + $0x98] sm:$0xff]  ;;  %s954_s30 = smov [#allocation3]  }
  0x17   :  { %v235_v46 = vadd.f32 %v234_v39, %v232_v32  ;;  %v95_v48 = vadd.f32 %v94_v24, %v92_v23  ;;  %v151_v4 = vmul.f32 %v810_v36, %v1073_v15  ;;  %v181_v49 = vadd.f32 %v180_v31, %v179_v19  ;;  %v839_v12 = vld [vmem:[%s1597_s4 + $0x160] sm:$0xff]  ;;  %v840_v13 = vld [vmem:[%s1597_s4 + $0x168] sm:$0xff]  ;;  %v806_v58 = vld [vmem:[%s1597_s4 + $0xb8] sm:$0xff]  ;;  %s756_s13 = sshll.u32 %s954_s30, 4  ;;  %s757_s13 = int_to_ptr.vmem [resolvable:$true] %s756_s13 }
  0x18   :  { %v64_v50 = vrot.slane %v63_v33, 1  ;;  %v123_v52 = vrot.slane %v122_v35, 1  ;;  %v153_v53 = vadd.f32 %v152_v30, %v150_v27  ;;  %v132_v55 = vmul.f32 %v805_v41, %v1068_v14  ;;  %v825_v60 = vld [vmem:[%s1597_s4 + $0x150] sm:$0xff]  ;;  %v1256_v10 = vld [vmem:[%s1593_s0 + $0x8] sm:$0xf]  ;;  %v826_v1 = vld [vmem:[%s1597_s4 + $0x158] sm:$0xff] }
  0x19   :  { %v236_v54 = vadd.f32 %v235_v46, %v233_v37  ;;  %v207_v56 = vmul.f32 %v823_v44, %v1095_v28  ;;  %v208_v57 = vmul.f32 %v824_v45, %v1100_v29  ;;  %v134_v59 = vadd.f32 %v131_v43, %v130_v42  ;;  %v841_v9 = vld [vmem:[%s1597_s4 + $0x170] sm:$0xff]  ;;  %v298_v21 = vld [vmem:[%s1596_s3 + $0x1c] sm:$0xf]  ;;  %v820_v41 = vld [vmem:[%s1597_s4 + $0xc8] sm:$0xff] }
  0x1a   :  { %v266_v63 = vmul.f32 %v839_v12, %v1158_v61  ;;  %v267_v2 = vmul.f32 %v840_v13, %v1165_v3  ;;  %v1246_v14 = vmul.f32 %v790_v51, %v1049_v8  ;;  %v1248_v5 = vadd.f32 %v75_v47, %v73_v40  ;;  %v297_v8 = vld [vmem:[%s1596_s3 + $0x18] sm:$0xf]  ;;  %v819_v40 = vld [vmem:[%s1597_s4 + $0xc0] sm:$0xff] }
  0x1b   :  { %v237_v62 = vrot.slane %v236_v54, 4  ;;  %v96_v6 = vrot.slane %v95_v48, 4  ;;  %v182_v7 = vrot.slane %v181_v49, 1  ;;  %v65_v16 = vadd.f32 %v64_v50, %v63_v33  ;;  %v842_v32 = vld [vmem:[%s1597_s4 + $0x178] sm:$0xff]  ;;  %v1301_v13 = vld [vmem:[%s1595_s2] ss:$0 sm:$0xff] }
  0x1c   :  { %v124_v17 = vadd.f32 %v123_v52, %v122_v35  ;;  %v154_v18 = vadd.f32 %v153_v53, %v151_v4  ;;  %v133_v22 = vmul.f32 %v806_v58, %v1073_v15  ;;  %v209_v23 = vmul.f32 %v825_v60, %v1111_v34  ;;  %v1278_v35 = vld [vmem:[%s1593_s0 + $0x4] sm:$0xf]  ;;  %v291_v4 = vld [vmem:[%s1596_s3] sm:$0xf]  ;;  %v304_v53 = vld [vmem:[%s1596_s3 + $0x34] sm:$0xf] }
  0x1d   :  { %v238_v19 = vadd.f32 %v237_v62, %v236_v54  ;;  %v211_v24 = vadd.f32 %v208_v57, %v207_v56  ;;  %vm279_vm0 = vcmask 1040384   ;;  %v135_v0 = vadd.f32 %v134_v59, %v132_v55  ;;  %v821_v60 = vld [vmem:[%s1597_s4 + $0xd0] sm:$0xff] }
  0x1e   :  { %v268_v26 = vmul.f32 %v841_v9, %v1179_v11  ;;  %v270_v27 = vadd.f32 %v267_v2, %v266_v63  ;;  %v97_v30 = vadd.f32 %v96_v6, %v95_v48  ;;  %v183_v31 = vadd.f32 %v182_v7, %v181_v49  ;;  %v1295_v49 = vld [vmem:[%s1593_s0] sm:$0xf]  ;;  %v294_v2 = vld [vmem:[%s1596_s3 + $0xc] sm:$0xf] }
  0x1f   :  { %v239_v25 = vrot.slane %v238_v19, 2  ;;  %v319_v15 = vmul.f32 %v1256_v10, %v297_v8  ;;  %v339_v33 = vmul.f32 %v1256_v10, %v298_v21  ;;  %v155_v36 = vrot.slane %v154_v18, 4 }
  0x20   :  { %v280_v39 = vsel %vm279_vm0, %v65_v16, %v124_v17  ;;  %vm281_vm1 = vcmask 1041408   ;;  %v210_v42 = vmul.f32 %v826_v1, %v1121_v38  ;;  %v212_v43 = vadd.f32 %v211_v24, %v209_v23 }
  0x21   :  { %v240_v37 = vadd.f32 %v239_v25, %v238_v19  ;;  %v843_v44 = vmul.f32 -1.442695, %v319_v15  ;;  %v844_v45 = vmul.f32 -1.442695, %v339_v33  ;;  %v269_v47 = vmul.f32 %v842_v32, %v1189_v20  ;;  %v822_v25 = vld [vmem:[%s1597_s4 + $0xd8] sm:$0xff] }
  0x22   :  { %v271_v48 = vadd.f32 %v270_v27, %v268_v26  ;;  %v282_v12 = vsel %vm281_vm1, %v280_v39, %v183_v31  ;;  %vm283_vm2 = vcmask 1042432   ;;  %v948_v50 = vmov 0.0  }
  0x23   :  { %v241_v46 = vrot.slane %v240_v37, 1  ;;  %862 = vpow2.f32 %v843_v44  ;;  %466 = vst [vmem:[#allocation2] sm:$0x7] %v948_v50  ;;  %vm469_vm3 = vcmask 1043456   ;;  %v98_v51 = vrot.slane %v97_v30, 2 }
  0x24   :  { %864 = vpow2.f32 %v844_v45  ;;  %v490_v54 = vsel %vm469_vm3, %v1278_v35, 0.0  ;;  %v189_v55 = vmul.f32 %v819_v40, %v1095_v28  ;;  %v190_v56 = vmul.f32 %v820_v41, %v1100_v29 }
  0x25   :  { %v242_v52 = vadd.f32 %v241_v46, %v240_v37  ;;  %v491_v57 = vrot.slane %v490_v54, 4  ;;  %v310_v58 = vmul.f32 %v291_v4, %v1295_v49  ;;  %v156_v59 = vadd.f32 %v155_v36, %v154_v18 }
  0x26   :  { %v213_v62 = vadd.f32 %v212_v43, %v210_v42  ;;  %v272_v6 = vadd.f32 %v271_v48, %v269_v47  ;;  %v404_v28 = vmul.f32 %v1301_v13, %v304_v53  ;;  %v77_v9 = vadd.f32 %v1248_v5, %v1246_v14  ;;  %v835_v14 = vld [vmem:[%s1597_s4 + $0xe0] sm:$0xff]  ;;  %v837_v43 = vld [vmem:[%s1597_s4 + $0xf0] sm:$0xff] }
  0x27   :  { %v284_v63 = vsel %vm283_vm2, %v282_v12, %v242_v52  ;;  %v492_v7 = vadd.f32 %v491_v57, %v490_v54  ;;  %v99_v16 = vadd.f32 %v98_v51, %v97_v30  ;;  %v136_v17 = vadd.f32 %v135_v0, %v133_v22  ;;  %v301_v12 = vld [vmem:[%s1596_s3 + $0x28] sm:$0xf] }
  0x28   :  { %v311_v29 = vadd.f32 %v310_v58, %v284_v63  ;;  %v191_v19 = vmul.f32 %v821_v60, %v1111_v34  ;;  %v193_v8 = vadd.f32 %v190_v56, %v189_v55  ;;  %v157_v1 = vrot.slane %v156_v59, 2  ;;  %v836_v34 = vld [vmem:[%s1597_s4 + $0xe8] sm:$0xff]  ;;  %v838_v60 = vld [vmem:[%s1597_s4 + $0xf8] sm:$0xff] }
  0x29   :  { %v863_v18 = vpop.eup %862  ;;  %v493_v21 = vrot.slane %v492_v7, 2  ;;  %v214_v26 = vrot.slane %v213_v62, 4  ;;  %v273_v5 = vrot.slane %v272_v6, 4  ;;  %v78_v31 = vrot.slane %v77_v9, 4 }
  0x2a   :  { %v312_v23 = vadd.f32 %v311_v29, %v294_v2  ;;  %v865_v24 = vpop.eup %864  ;;  %v1325_v27 = vadd.f32 1.0, %v863_v18  ;;  %v137_v32 = vrot.slane %v136_v17, 4  ;;  %v100_v15 = vrot.slane %v99_v16, 1  ;;  %v489_v45 = vld [vmem:[#allocation2 + $0x2] sm:$0x1] }
  0x2b   :  { %v1333_v22 = vadd.f32 1.0, %v865_v24  ;;  %v494_v0 = vadd.f32 %v493_v21, %v492_v7  ;;  %v192_v33 = vmul.f32 %v822_v25, %v1121_v38  ;;  %v194_v36 = vadd.f32 %v193_v8, %v191_v19  ;;  %v300_v38 = vld [vmem:[%s1596_s3 + $0x24] sm:$0xf]  ;;  %v302_v7 = vld [vmem:[%s1596_s3 + $0x2c] sm:$0xf] }
  0x2c   :  { %v405_v30 = vadd.f32 %v404_v28, %v312_v23  ;;  %866 = vrcp.f32 %v1325_v27  ;;  %v158_v37 = vadd.f32 %v157_v1, %v156_v59  ;;  %v248_v39 = vmul.f32 %v835_v14, %v1158_v61  ;;  %v303_v8 = vld [vmem:[%s1596_s3 + $0x30] sm:$0xf] }
  0x2d   :  { %868 = vrcp.f32 %v1333_v22  ;;  %v249_v40 = vmul.f32 %v836_v34, %v1165_v3  ;;  %v495_v41 = vrot.slane %v494_v0, 1  ;;  %v215_v42 = vadd.f32 %v214_v26, %v213_v62 }
  0x2e   :  { %v274_v44 = vadd.f32 %v273_v5, %v272_v6  ;;  %v847_v46 = vmul.f32 -1.442695, %v405_v30  ;;  %v1343_v47 = vadd.f32 %v78_v31, %v77_v9  ;;  %v1348_v4 = vadd.f32 %v100_v15, %v99_v16 }
  0x2f   :  { %v496_v48 = vadd.f32 %v495_v41, %v494_v0  ;;  %v1350_v61 = vadd.f32 %v137_v32, %v136_v17  ;;  %v1352_v3 = vadd.f32 %v194_v36, %v192_v33  ;;  %v159_v51 = vrot.slane %v158_v37, 1 }
  0x30   :  { %870 = vpow2.f32 %v847_v46  ;;  %v250_v52 = vmul.f32 %v837_v43, %v1179_v11  ;;  %v252_v53 = vadd.f32 %v249_v40, %v248_v39  ;;  %v216_v56 = vrot.slane %v215_v42, 2 }
  0x31   :  { %v497_v54 = vadd.f32 %v496_v48, %v489_v45  ;;  %v275_v57 = vrot.slane %v274_v44, 2  ;;  %v360_v59 = vmul.f32 %v300_v38, %v1295_v49  ;;  %vm329_vm4 = vweird.f32 %v1325_v27 }
  0x32   :  { %v867_v50 = vpop.eup %866  ;;  %v335_v62 = vand.u32 2147483648, %v1325_v27  ;;  %v382_v11 = vmul.f32 %v301_v12, %v1295_v49  ;;  %v333_v6 = vand.u32 2147483647, %v1325_v27  ;;  %v355_v28 = vand.u32 2147483648, %v1333_v22 }
  0x33   :  { %v869_v55 = vpop.eup %868  ;;  %v325_v58 = vmul.f32 %v867_v50, %v1325_v27  ;;  %498 = vst [vmem:[#allocation2 + $0x2] sm:$0x1] %v497_v54  ;;  %vm330_vm5 = vweird.f32 %v867_v50  ;;  %vm349_vm6 = vweird.f32 %v1333_v22  ;;  %v353_v9 = vand.u32 2147483647, %v1333_v22  ;;  %v293_v54 = vld [vmem:[%s1596_s3 + $0x8] sm:$0xf] }
  0x34   :  { %v345_v63 = vmul.f32 %v869_v55, %v1333_v22  ;;  %vm350_vm7 = vweird.f32 %v869_v55  ;;  %v217_v17 = vadd.f32 %v216_v56, %v215_v42  ;;  %v251_v18 = vmul.f32 %v838_v60, %v1189_v20  ;;  %vm1381_vm8 = vmor %vm329_vm4, %vm330_vm5 }
  0x35   :  { %v326_v2 = vsub.f32 1.0, %v325_v58  ;;  %v253_v19 = vadd.f32 %v252_v53, %v250_v52  ;;  %v276_v23 = vadd.f32 %v275_v57, %v274_v44  ;;  %v336_v1 = vor.u32 1.1754944e-38, %v335_v62  ;;  %vm1390_vm10 = vmor %vm349_vm6, %vm350_vm7 }
  0x36   :  { %v346_v29 = vsub.f32 1.0, %v345_v63  ;;  %v871_v16 = vpop.eup %870  ;;  %vm334_vm9 = vcmp.eq.f32.partialorder %v333_v6, 8.507059e+37  ;;  %v356_v34 = vor.u32 1.1754944e-38, %v355_v28  ;;  %v361_v5 = vadd.f32 %v360_v59, %v302_v7 }
  0x37   :  { %v327_v21 = vmul.f32 %v867_v50, %v326_v2  ;;  %v1385_v26 = vadd.f32 1.0, %v871_v16  ;;  %vm354_vm11 = vcmp.eq.f32.partialorder %v353_v9, 8.507059e+37  ;;  %v383_v0 = vadd.f32 %v382_v11, %v303_v8 }
  0x38   :  { %v347_v25 = vmul.f32 %v869_v55, %v346_v29  ;;  %v160_v30 = vadd.f32 %v159_v51, %v158_v37  ;;  %v196_v31 = vrot.slane %v1352_v3, 4  ;;  %v218_v32 = vrot.slane %v217_v17, 1 }
  0x39   :  { %v328_v14 = vadd.f32 %v867_v50, %v327_v21  ;;  %872 = vrcp.f32 %v1385_v26  ;;  %v254_v22 = vadd.f32 %v253_v19, %v251_v18  ;;  %v277_v43 = vrot.slane %v276_v23, 1 }
  0x3a   :  { %v348_v27 = vadd.f32 %v869_v55, %v347_v25  ;;  %v504_v33 = vld [vmem:[#allocation2 + $0x2] sm:$0x1]  ;;  %v80_v37 = vrot.slane %v1343_v47, 2  ;;  %v139_v45 = vrot.slane %v1350_v61, 2  ;;  %v219_v46 = vadd.f32 %v218_v32, %v217_v17  ;;  %v467_v25 = vld [vmem:[#allocation2] sm:$0x1] }
  0x3b   :  { %v332_v15 = vsel %vm1381_vm8, %v867_v50, %v328_v14  ;;  %v505_v40 = vsel %vm279_vm0, %v504_v33, 0.0  ;;  %v197_v12 = vadd.f32 %v196_v31, %v1352_v3  ;;  %v255_v50 = vrot.slane %v254_v22, 4 }
  0x3c   :  { %v337_v36 = vsel %vm334_vm9, %v336_v1, %v332_v15  ;;  %v352_v39 = vsel %vm1390_vm10, %v869_v55, %v348_v27  ;;  %506 = vadd.xlane.f32.xlu0 %v505_v40  ;;  %v288_v51 = vsel %vm279_vm0, %v1348_v4, %v160_v30  ;;  %v278_v53 = vadd.f32 %v277_v43, %v276_v23 }
  0x3d   :  { %v357_v41 = vsel %vm354_vm11, %v356_v34, %v352_v39  ;;  %v362_v42 = vadd.f32 %v361_v5, %v337_v36  ;;  %v81_v56 = vadd.f32 %v80_v37, %v1343_v47  ;;  %v140_v57 = vadd.f32 %v139_v45, %v1350_v61  ;;  %v296_v61 = vld [vmem:[%s1596_s3 + $0x14] sm:$0xf] }
  0x3e   :  { %v384_v44 = vadd.f32 %v383_v0, %v357_v41  ;;  %v289_v3 = vsel %vm281_vm1, %v288_v51, %v219_v46  ;;  %v198_v58 = vrot.slane %v197_v12, 2  ;;  %v256_v59 = vadd.f32 %v255_v50, %v254_v22 }
  0x3f   :  { %v845_v38 = vmul.f32 -1.442695, %v362_v42  ;;  %v1403_v48 = vpop.eup %872  ;;  %v316_v4 = vmul.f32 %v293_v54, %v1295_v49  ;;  %v290_v60 = vsel %vm283_vm2, %v289_v3, %v278_v53  ;;  %v82_v11 = vrot.slane %v81_v56, 1 }
  0x40   :  { %v846_v52 = vmul.f32 -1.442695, %v384_v44  ;;  %v411_v55 = vmul.f32 %v1403_v48, %v1385_v26  ;;  %v141_v2 = vrot.slane %v140_v57, 1  ;;  %v199_v28 = vadd.f32 %v198_v58, %v197_v12  ;;  %v292_v44 = vld [vmem:[%s1596_s3 + $0x4] sm:$0xf] }
  0x41   :  { %874 = vpow2.f32 %v845_v38  ;;  %v257_v7 = vrot.slane %v256_v59, 2  ;;  %v317_v9 = vadd.f32 %v316_v4, %v290_v60  ;;  %v83_v17 = vadd.f32 %v82_v11, %v81_v56  ;;  %v295_v11 = vld [vmem:[%s1596_s3 + $0x10] sm:$0xf] }
  0x42   :  { %876 = vpow2.f32 %v846_v52  ;;  %v412_v62 = vsub.f32 1.0, %v411_v55  ;;  %v142_v18 = vadd.f32 %v141_v2, %v140_v57  ;;  %v200_v19 = vrot.slane %v199_v28, 1 }
  0x43   :  { %v258_v8 = vadd.f32 %v257_v7, %v256_v59  ;;  %vm415_vm12 = vweird.f32 %v1385_v26  ;;  %vm416_vm13 = vweird.f32 %v1403_v48  ;;  %v318_v21 = vadd.f32 %v317_v9, %v296_v61 }
  0x44   :  { %v413_v16 = vmul.f32 %v1403_v48, %v412_v62  ;;  %v419_v23 = vand.u32 2147483647, %v1385_v26  ;;  %v421_v24 = vand.u32 2147483648, %v1385_v26  ;;  %vm1427_vm14 = vmor %vm415_vm12, %vm416_vm13  ;;  %v201_v20 = vadd.f32 %v200_v19, %v199_v28  ;;  %v305_v28 = vld [vmem:[%s1596_s3 + $0x38] sm:$0xf] }
  0x45   :  { %v259_v34 = vrot.slane %v258_v8, 1  ;;  %v285_v5 = vsel %vm279_vm0, %v83_v17, %v142_v18  ;;  %v313_v53 = vmul.f32 %v292_v44, %v1295_v49  ;;  %v529_v44 = vld [vmem:[%s1598_s5 + $0x28] sm:$0xff] }
  0x46   :  { %v414_v1 = vadd.f32 %v1403_v48, %v413_v16  ;;  %vm1432_vm15 = vcmp.eq.f32.partialorder %v419_v23, 8.507059e+37  ;;  %v422_v31 = vor.u32 1.1754944e-38, %v421_v24  ;;  %v286_v43 = vsel %vm281_vm1, %v285_v5, %v201_v20 }
  0x47   :  { %v875_v63 = vpop.eup %874  ;;  %v260_v42 = vadd.f32 %v259_v34, %v258_v8 }
  0x48   :  { %v877_v6 = vpop.eup %876  ;;  %v366_v29 = vadd.f32 1.0, %v875_v63  ;;  %v418_v15 = vsel %vm1427_vm14, %v1403_v48, %v414_v1 }
  0x49   :  { %v388_v47 = vadd.f32 1.0, %v877_v6  ;;  %v423_v50 = vsel %vm1432_vm15, %v422_v31, %v418_v15  ;;  %v287_v55 = vsel %vm283_vm2, %v286_v43, %v260_v42  ;;  %v299_v6 = vld [vmem:[%s1596_s3 + $0x20] sm:$0xf]  ;;  %s951_s3 = smov 64  }
  0x4a   :  { %878 = vrcp.f32 %v366_v29  ;;  %vm372_vm4 = vweird.f32 %v366_v29  ;;  %v378_v26 = vand.u32 2147483648, %v366_v29  ;;  %v376_v22 = vand.u32 2147483647, %v366_v29  ;;  %v528_v42 = vld [vmem:[%s1598_s5 + $0x20] sm:$0xff] }
  0x4b   :  { %880 = vrcp.f32 %v388_v47  ;;  %v400_v36 = vand.u32 2147483648, %v388_v47  ;;  %vm394_vm0 = vweird.f32 %v388_v47  ;;  %v398_v40 = vand.u32 2147483647, %v388_v47 }
  0x4c   :  { %882 = vtanh.f32 %v318_v21  ;;  %v379_v45 = vor.u32 1.1754944e-38, %v378_v26  ;;  %vm377_vm8 = vcmp.eq.f32.partialorder %v376_v22, 8.507059e+37  ;;  %v431_v52 = vsub.f32 1.0, %v423_v50 }
  0x4d   :  { %v401_v12 = vor.u32 1.1754944e-38, %v400_v36  ;;  %vm399_vm1 = vcmp.eq.f32.partialorder %v398_v40, 8.507059e+37  ;;  %v314_v60 = vadd.f32 %v313_v53, %v287_v55  ;;  %v359_v61 = vmul.f32 %v1256_v10, %v299_v6  ;;  %v525_v10 = vld [vmem:[%s1598_s5 + $0x8] sm:$0xff]  ;;  %v530_v53 = vld [vmem:[%s1598_s5 + $0x30] sm:$0xff] }
  0x4e   :  { %v432_v59 = vmul.f32 %v1301_v13, %v431_v52 }
  0x50   :  { %v879_v14 = vpop.eup %878 }
  0x51   :  { %v881_v27 = vpop.eup %880  ;;  %v368_v0 = vmul.f32 %v879_v14, %v366_v29  ;;  %vm373_vm5 = vweird.f32 %v879_v14  ;;  %v315_v29 = vadd.f32 %v314_v60, %v295_v11  ;;  %v479_v60 = vld [vmem:[#allocation2 + $0x1] sm:$0x1]  ;;  %v559_v11 = vld [vmem:[%s1599_s6 + $0x10] sm:$0xff] }
  0x52   :  { %v390_v32 = vmul.f32 %v881_v27, %v388_v47  ;;  %vm395_vm6 = vweird.f32 %v881_v27  ;;  %vm1444_vm7 = vmor %vm372_vm4, %vm373_vm5  ;;  %v883_v38 = vpop.eup %882  ;;  %vm687_vm4 = vcmask 31744   ;;  %vm711_vm5 = vcmask 24576  }
  0x53   :  { %v369_v33 = vsub.f32 1.0, %v368_v0  ;;  %vm396_vm9 = vmor %vm394_vm0, %vm395_vm6  ;;  %v526_v0 = vld [vmem:[%s1598_s5 + $0x10] sm:$0xff]  ;;  %vm747_vm0 = vcmask 253952  }
  0x54   :  { %v391_v39 = vsub.f32 1.0, %v390_v32 }
  0x55   :  { %v370_v41 = vmul.f32 %v879_v14, %v369_v33 }
  0x56   :  { %v392_v46 = vmul.f32 %v881_v27, %v391_v39 }
  0x57   :  { %v371_v48 = vadd.f32 %v879_v14, %v370_v41  ;;  %v527_v41 = vld [vmem:[%s1598_s5 + $0x18] sm:$0xff] }
  0x58   :  { %v393_v51 = vadd.f32 %v881_v27, %v392_v46 }
  0x59   :  { %v375_v54 = vsel %vm1444_vm7, %v879_v14, %v371_v48 }
  0x5a   :  { %v380_v56 = vsel %vm377_vm8, %v379_v45, %v375_v54  ;;  %v397_v57 = vsel %vm396_vm9, %v881_v27, %v393_v51  ;;  %v524_v27 = vld [vmem:[%s1598_s5] sm:$0xff]  ;;  %v531_v54 = vld [vmem:[%s1598_s5 + $0x38] sm:$0xff] }
  0x5b   :  { %v402_v3 = vsel %vm399_vm1, %v401_v12, %v397_v57  ;;  %v426_v58 = vmul.f32 %v423_v50, %v380_v56 }
  0x5c   :  { %v433_v4 = vmul.f32 %v423_v50, %v402_v3 }
  0x5d   :  { %v427_v62 = vsub.f32 1.0, %v426_v58  ;;  %v429_v63 = vmul.f32 %v883_v38, %v426_v58 }
  0x5e   :  { %v434_v49 = vmul.f32 %v883_v38, %v433_v4 }
  0x5f   :  { %v428_v2 = vmul.f32 %v1301_v13, %v427_v62 }
  0x60   :  { %v435_v7 = vadd.f32 %v434_v49, %v432_v59  ;;  %v558_v49 = vld [vmem:[%s1599_s6 + $0x8] sm:$0xff] }
  0x61   :  { %v430_v9 = vadd.f32 %v429_v63, %v428_v2  ;;  %v557_v2 = vld [vmem:[%s1599_s6] sm:$0xff] }
  0x62   :  { %v468_v47 = vmul.f32 %v1278_v35, %v435_v7 }
  0x63   :  { %v436_v16 = vmul.f32 %v430_v9, %v305_v28 }
  0x64   :  { %v470_v17 = vsel %vm469_vm3, %v468_v47, 0.0  ;;  %v560_v47 = vld [vmem:[%s1599_s6 + $0x18] sm:$0xff] }
  0x65   :  { %v437_v18 = vadd.f32 %v436_v16, %v315_v29  ;;  %v471_v13 = vrot.slane %v470_v17, 4 }
  0x67   :  { %v438_v19 = vadd.f32 %v437_v18, %v359_v61  ;;  %v472_v8 = vadd.f32 %v471_v13, %v470_v17  ;;  %v561_v61 = vld [vmem:[%s1599_s6 + $0x20] sm:$0xff]  ;;  %v563_v13 = vld [vmem:[%s1599_s6 + $0x30] sm:$0xff] }
  0x69   :  { %v848_v21 = vmul.f32 -1.442695, %v438_v19  ;;  %v473_v23 = vrot.slane %v472_v8, 2  ;;  %v564_v19 = vld [vmem:[%s1599_s6 + $0x38] sm:$0xff] }
  0x6b   :  { %884 = vpow2.f32 %v848_v21  ;;  %v474_v24 = vadd.f32 %v473_v23, %v472_v8 }
  0x6d   :  { %v475_v1 = vrot.slane %v474_v24, 1 }
  0x6f   :  { %v476_v14 = vadd.f32 %v475_v1, %v474_v24 }
  0x71   :  { %v885_v20 = vpop.eup %884  ;;  %v477_v34 = vadd.f32 %v476_v14, %v467_v25  ;;  %v949_v14 = vmov 0  }
  0x72   :  { %v442_v5 = vadd.f32 1.0, %v885_v20  ;;  %858 = vset.pattern.permute.xlu1 %v949_v14  ;;  %857 = vset.pattern.permute.xlu0 %v949_v14 }
  0x73   :  { %478 = vst [vmem:[#allocation2] sm:$0x1] %v477_v34  ;;  %856 = vset.pattern.permute.xlu2 %v949_v14 }
  0x74   :  { %886 = vrcp.f32 %v442_v5  ;;  %v454_v32 = vand.u32 2147483648, %v442_v5  ;;  %vm448_vm2 = vweird.f32 %v442_v5  ;;  %v452_v39 = vand.u32 2147483647, %v442_v5 }
  0x75   :  { %888 = vtanh.f32 %v430_v9  ;;  %v562_v9 = vld [vmem:[%s1599_s6 + $0x28] sm:$0xff] }
  0x76   :  { %v455_v43 = vor.u32 1.1754944e-38, %v454_v32  ;;  %vm453_vm12 = vcmp.eq.f32.partialorder %v452_v39, 8.507059e+37 }
  0x7a   :  { %v887_v30 = vpop.eup %886  ;;  %v860_v31 = vld [vmem:[#allocation2] ss:$0 sm:$0xff] }
  0x7b   :  { %v444_v26 = vmul.f32 %v887_v30, %v442_v5  ;;  %v534_v15 = vmul.f32 %v860_v31, %v525_v10  ;;  %v533_v33 = vmul.f32 %v860_v31, %v524_v27  ;;  %v535_v22 = vmul.f32 %v860_v31, %v526_v0  ;;  %v889_v37 = vpop.eup %888 }
  0x7c   :  { %vm449_vm10 = vweird.f32 %v887_v30  ;;  %v536_v46 = vmul.f32 %v860_v31, %v527_v41  ;;  %v537_v38 = vmul.f32 %v860_v31, %v528_v42  ;;  %v538_v12 = vmul.f32 %v860_v31, %v529_v44 }
  0x7d   :  { %v445_v36 = vsub.f32 1.0, %v444_v26  ;;  %543 = vadd.xlane.f32.xlu1 %v534_v15  ;;  %541 = vadd.xlane.f32.xlu0 %v533_v33  ;;  %vm450_vm11 = vmor %vm448_vm2, %vm449_vm10  ;;  %v539_v57 = vmul.f32 %v860_v31, %v530_v53  ;;  %v540_v3 = vmul.f32 %v860_v31, %v531_v54 }
  0x7e   :  { %545 = vadd.xlane.f32.xlu2 %v535_v22 }
  0x7f   :  { %v446_v40 = vmul.f32 %v887_v30, %v445_v36 }
  0x81   :  { %v447_v45 = vadd.f32 %v887_v30, %v446_v40 }
  0x83   :  { %v451_v48 = vsel %vm450_vm11, %v887_v30, %v447_v45 }
  0x84   :  { %v456_v50 = vsel %vm453_vm12, %v455_v43, %v451_v48  ;;  %v609_v48 = vld [vmem:[%s1600_s7 + $0x10] sm:$0xff] }
  0x85   :  { %v459_v51 = vmul.f32 %v889_v37, %v456_v50  ;;  %547 = vadd.xlane.f32.xlu1 %v536_v46  ;;  %549 = vadd.xlane.f32.xlu0 %v537_v38  ;;  %v608_v38 = vld [vmem:[%s1600_s7 + $0x8] sm:$0xff] }
  0x86   :  { %551 = vadd.xlane.f32.xlu2 %v538_v12 }
  0x87   :  { %v460_v52 = vmul.f32 %v1278_v35, %v459_v51  ;;  %v607_v51 = vld [vmem:[%s1600_s7] sm:$0xff] }
  0x89   :  { %461 = vst [vmem:[%s1603_s10] sm:$0xf] %v460_v52  ;;  %v480_v55 = vsel %vm469_vm3, %v460_v52, 0.0  ;;  %s769_s10 = sshll.u32 %s1605_s12, 4  ;;  %s770_s10 = int_to_ptr.hbm [resolvable:$true] %s769_s10 }
  0x8a   :  { %v481_v56 = vrot.slane %v480_v55, 4 }
  0x8c   :  { %v482_v58 = vadd.f32 %v481_v56, %v480_v55 }
  0x8d   :  { %553 = vadd.xlane.f32.xlu1 %v539_v57  ;;  %555 = vadd.xlane.f32.xlu0 %v540_v3 }
  0x8e   :  { %v483_v35 = vrot.slane %v482_v58, 2 }
  0x90   :  { %v484_v59 = vadd.f32 %v483_v35, %v482_v58 }
  0x92   :  { %v485_v4 = vrot.slane %v484_v59, 1 }
  0x94   :  { %v486_v62 = vadd.f32 %v485_v4, %v484_v59 }
  0x96   :  { %v487_v63 = vadd.f32 %v486_v62, %v479_v60  ;;  %v612_v62 = vld [vmem:[%s1600_s7 + $0x28] sm:$0xff] }
  0x98   :  { %488 = vst [vmem:[#allocation2 + $0x1] sm:$0x1] %v487_v63  ;;  %v610_v63 = vld [vmem:[%s1600_s7 + $0x18] sm:$0xff] }
  0x9f   :  { %v861_v6 = vld [vmem:[#allocation2 + $0x1] ss:$0 sm:$0xff] }
  0xa0   :  { %v568_v28 = vmul.f32 %v861_v6, %v559_v11  ;;  %v567_v7 = vmul.f32 %v861_v6, %v558_v49  ;;  %v566_v29 = vmul.f32 %v861_v6, %v557_v2  ;;  %v571_v16 = vmul.f32 %v861_v6, %v562_v9 }
  0xa1   :  { %v569_v17 = vmul.f32 %v861_v6, %v560_v47  ;;  %v570_v18 = vmul.f32 %v861_v6, %v561_v61  ;;  %v572_v8 = vmul.f32 %v861_v6, %v563_v13  ;;  %v573_v21 = vmul.f32 %v861_v6, %v564_v19 }
  0xa2   :  { %578 = vadd.xlane.f32.xlu0 %v568_v28  ;;  %576 = vadd.xlane.f32.xlu2 %v567_v7 }
  0xa3   :  { %574 = vadd.xlane.f32.xlu1 %v566_v29 }
  0xaa   :  { %584 = vadd.xlane.f32.xlu0 %v571_v16  ;;  %580 = vadd.xlane.f32.xlu2 %v569_v17  ;;  %v611_v16 = vld [vmem:[%s1600_s7 + $0x20] sm:$0xff] }
  0xab   :  { %582 = vadd.xlane.f32.xlu1 %v570_v18  ;;  %v614_v18 = vld [vmem:[%s1600_s7 + $0x38] sm:$0xff] }
  0xaf   :  { %v507_v23 = vpop.xlane.xlu0 %506 }
  0xb0   :  { %v508_v24 = vmul.f32 0.03125, %v507_v23 }
  0xb2   :  { %586 = vadd.xlane.f32.xlu2 %v572_v8  ;;  %890 = vrcp.f32 %v508_v24  ;;  %vm514_vm3 = vweird.f32 %v508_v24  ;;  %v520_v31 = vand.u32 2147483648, %v508_v24  ;;  %v518_v33 = vand.u32 2147483647, %v508_v24 }
  0xb3   :  { %588 = vadd.xlane.f32.xlu1 %v573_v21 }
  0xb4   :  { %v521_v36 = vor.u32 1.1754944e-38, %v520_v31  ;;  %vm519_vm15 = vcmp.eq.f32.partialorder %v518_v33, 8.507059e+37 }
  0xb8   :  { %v891_v20 = vpop.eup %890 }
  0xb9   :  { %v510_v34 = vmul.f32 %v891_v20, %v508_v24  ;;  %vm515_vm13 = vweird.f32 %v891_v20 }
  0xba   :  { %vm516_vm14 = vmor %vm514_vm3, %vm515_vm13 }
  0xbb   :  { %v511_v0 = vsub.f32 1.0, %v510_v34 }
  0xbd   :  { %v512_v30 = vmul.f32 %v891_v20, %v511_v0  ;;  %v632_v0 = vld [vmem:[%s1601_s8 + $0x8] sm:$0xff] }
  0xbf   :  { %v513_v15 = vadd.f32 %v891_v20, %v512_v30  ;;  %v633_v30 = vld [vmem:[%s1601_s8 + $0x10] sm:$0xff] }
  0xc1   :  { %v517_v39 = vsel %vm516_vm14, %v891_v20, %v513_v15  ;;  %v502_v20 = vld [vmem:[#allocation2] sm:$0x1] }
  0xc2   :  { %v1521_v40 = vsel %vm519_vm15, %v521_v36, %v517_v39 }
  0xc3   :  { %v598_v43 = vperm.slane %v1521_v40, 0 }
  0xf0   :  { %v542_v1 = vpop.xlane.xlu0 %541  ;;  %v544_v25 = vpop.xlane.xlu1 %543 }
  0xf1   :  { %v546_v5 = vpop.xlane.xlu2 %545 }
  0xf8   :  { %v550_v10 = vpop.xlane.xlu0 %549  ;;  %v548_v27 = vpop.xlane.xlu1 %547 }
  0xf9   :  { %v552_v26 = vpop.xlane.xlu2 %551 }
 0x100   :  { %v556_v32 = vpop.xlane.xlu0 %555  ;;  %v554_v22 = vpop.xlane.xlu1 %553 }
 0x115   :  { %v579_v41 = vpop.xlane.xlu0 %578  ;;  %v577_v42 = vpop.xlane.xlu2 %576 }
 0x116   :  { %v592_v44 = vadd.f32 %v579_v41, %v546_v5  ;;  %v591_v37 = vadd.f32 %v577_v42, %v544_v25  ;;  %v575_v45 = vpop.xlane.xlu1 %574  ;;  %v613_v25 = vld [vmem:[%s1600_s7 + $0x30] sm:$0xff]  ;;  %v635_v42 = vld [vmem:[%s1601_s8 + $0x20] sm:$0xff] }
 0x117   :  { %v590_v46 = vadd.f32 %v575_v45, %v542_v1 }
 0x118   :  { %v601_v12 = vmul.f32 %v598_v43, %v592_v44  ;;  %v600_v50 = vmul.f32 %v598_v43, %v591_v37 }
 0x119   :  { %v599_v52 = vmul.f32 %v598_v43, %v590_v46 }
 0x11a   :  { %v616_v53 = vadd.f32 %v608_v38, %v600_v50  ;;  %v617_v54 = vadd.f32 %v609_v48, %v601_v12  ;;  %v636_v38 = vld [vmem:[%s1601_s8 + $0x28] sm:$0xff] }
 0x11b   :  { %v615_v55 = vadd.f32 %v607_v51, %v599_v52 }
 0x11c   :  { %v624_v56 = vmax.f32 %v616_v53, 0.0  ;;  %v625_v57 = vmax.f32 %v617_v54, 0.0  ;;  %v637_v53 = vld [vmem:[%s1601_s8 + $0x30] sm:$0xff] }
 0x11d   :  { %v585_v3 = vpop.xlane.xlu0 %584  ;;  %v581_v58 = vpop.xlane.xlu2 %580  ;;  %v623_v35 = vmax.f32 %v615_v55, 0.0 }
 0x11e   :  { %v595_v59 = vadd.f32 %v585_v3, %v552_v26  ;;  %v593_v4 = vadd.f32 %v581_v58, %v548_v27  ;;  %v583_v60 = vpop.xlane.xlu1 %582  ;;  %646 = vperm.xlu0 %857, %v624_v56   ;;  %651 = vperm.xlu1 %858, %v625_v57   ;;  %v631_v27 = vld [vmem:[%s1601_s8] sm:$0xff]  ;;  %v634_v26 = vld [vmem:[%s1601_s8 + $0x18] sm:$0xff] }
 0x11f   :  { %641 = vperm.xlu2 %856, %v623_v35   ;;  %v594_v2 = vadd.f32 %v583_v60, %v550_v10  ;;  %v638_v58 = vld [vmem:[%s1601_s8 + $0x38] sm:$0xff]  ;;  %s953_s8 = smov [#allocation5]  }
 0x120   :  { %v604_v11 = vmul.f32 %v598_v43, %v595_v59  ;;  %v602_v49 = vmul.f32 %v598_v43, %v593_v4 }
 0x121   :  { %v603_v9 = vmul.f32 %v598_v43, %v594_v2 }
 0x122   :  { %v620_v6 = vadd.f32 %v612_v62, %v604_v11  ;;  %v618_v28 = vadd.f32 %v610_v63, %v602_v49 }
 0x123   :  { %v619_v8 = vadd.f32 %v611_v16, %v603_v9 }
 0x124   :  { %v628_v7 = vmax.f32 %v620_v6, 0.0  ;;  %v626_v29 = vmax.f32 %v618_v28, 0.0 }
 0x125   :  { %v587_v47 = vpop.xlane.xlu2 %586  ;;  %v627_v24 = vmax.f32 %v619_v8, 0.0 }
 0x126   :  { %v589_v61 = vpop.xlane.xlu1 %588  ;;  %666 = vperm.xlu1 %858, %v628_v7   ;;  %v596_v13 = vadd.f32 %v587_v47, %v554_v22 }
 0x127   :  { %v597_v17 = vadd.f32 %v589_v61, %v556_v32  ;;  %656 = vperm.xlu2 %856, %v626_v29   ;;  %v709_v29 = vld [vmem:[%s1602_s9] sm:$0x1]  ;;  %s767_s9 = sshll.u32 %s953_s8, 4  ;;  %s768_s9 = int_to_ptr.vmem [resolvable:$true] %s767_s9 }
 0x128   :  { %v605_v23 = vmul.f32 %v598_v43, %v596_v13 }
 0x129   :  { %v606_v19 = vmul.f32 %v598_v43, %v597_v17 }
 0x12a   :  { %v621_v14 = vadd.f32 %v613_v25, %v605_v23 }
 0x12b   :  { %v622_v21 = vadd.f32 %v614_v18, %v606_v19 }
 0x12c   :  { %v629_v34 = vmax.f32 %v621_v14, 0.0 }
 0x12d   :  { %v630_v1 = vmax.f32 %v622_v21, 0.0 }
 0x12f   :  { %661 = vperm.xlu2 %856, %v627_v24   ;;  %676 = vperm.xlu1 %858, %v630_v1  }
 0x137   :  { %671 = vperm.xlu2 %856, %v629_v34   ;;  %737 = vrot.lane.b32.xlu1 %v502_v20, %s950_s15  ;;  %s758_s15 = sshll.u32 %s1604_s11, 4  ;;  %s759_s15 = int_to_ptr.hbm [resolvable:$true] %s758_s15 }
 0x13f   :  { %740 = vrot.lane.b32.xlu1 %v502_v20, %s951_s3 }
 0x147   :  { %743 = vrot.lane.b32.xlu1 %v502_v20, %s952_s16 }
 0x179   :  { %v642_v5 = vpop.permute.xlu2 %641 }
 0x17a   :  { %v679_v31 = vmul.f32 %v642_v5, %v631_v27 }
 0x17c   :  { %v688_v39 = vsel %vm687_vm4, %v679_v31, 0.0 }
 0x181   :  { %v657_v10 = vpop.permute.xlu2 %656 }
 0x182   :  { %v682_v41 = vmul.f32 %v657_v10, %v634_v26 }
 0x184   :  { %v693_v48 = vsel %vm687_vm4, %v682_v41, 0.0 }
 0x189   :  { %v662_v33 = vpop.permute.xlu2 %661 }
 0x18a   :  { %v683_v45 = vmul.f32 %v662_v33, %v635_v42 }
 0x18c   :  { %v695_v52 = vsel %vm687_vm4, %v683_v45, 0.0 }
 0x190   :  { %v647_v32 = vpop.permute.xlu0 %646  ;;  %v652_v15 = vpop.permute.xlu1 %651 }
 0x191   :  { %v680_v22 = vmul.f32 %v647_v32, %v632_v0  ;;  %v681_v36 = vmul.f32 %v652_v15, %v633_v30  ;;  %v672_v54 = vpop.permute.xlu2 %671 }
 0x192   :  { %v685_v57 = vmul.f32 %v672_v54, %v637_v53 }
 0x193   :  { %v689_v43 = vsel %vm687_vm4, %v680_v22, 0.0  ;;  %v691_v37 = vsel %vm687_vm4, %v681_v36, 0.0 }
 0x194   :  { %v690_v44 = vadd.f32 %v689_v43, %v688_v39  ;;  %v699_v59 = vsel %vm687_vm4, %v685_v57, 0.0 }
 0x196   :  { %v692_v46 = vadd.f32 %v691_v37, %v690_v44 }
 0x198   :  { %v694_v12 = vadd.f32 %v693_v48, %v692_v46  ;;  %v667_v50 = vpop.permute.xlu1 %666 }
 0x199   :  { %v684_v51 = vmul.f32 %v667_v50, %v636_v38 }
 0x19a   :  { %v696_v55 = vadd.f32 %v695_v52, %v694_v12 }
 0x19b   :  { %v697_v56 = vsel %vm687_vm4, %v684_v51, 0.0 }
 0x19c   :  { %v698_v3 = vadd.f32 %v697_v56, %v696_v55 }
 0x19e   :  { %v700_v60 = vadd.f32 %v699_v59, %v698_v3 }
 0x1a1   :  { %v677_v35 = vpop.permute.xlu1 %676 }
 0x1a2   :  { %v686_v4 = vmul.f32 %v677_v35, %v638_v58 }
 0x1a4   :  { %v701_v62 = vsel %vm687_vm4, %v686_v4, 0.0 }
 0x1a5   :  { %v702_v63 = vadd.f32 %v701_v62, %v700_v60 }
 0x1a7   :  { %v703_v11 = vrot.slane %v702_v63, 4 }
 0x1a9   :  { %v704_v49 = vadd.f32 %v703_v11, %v702_v63  ;;  %v738_v2 = vpop.permute.xlu1 %737 }
 0x1aa   :  { %v739_v61 = vadd.f32 %v738_v2, %v502_v20 }
 0x1ab   :  { %v705_v6 = vrot.slane %v704_v49, 2 }
 0x1ad   :  { %v706_v28 = vadd.f32 %v705_v6, %v704_v49 }
 0x1af   :  { %v707_v7 = vrot.slane %v706_v28, 1 }
 0x1b1   :  { %v741_v9 = vpop.permute.xlu1 %740  ;;  %v708_v47 = vadd.f32 %v707_v7, %v706_v28 }
 0x1b2   :  { %v742_v18 = vadd.f32 %v741_v9, %v739_v61 }
 0x1b3   :  { %v710_v16 = vadd.f32 %v709_v29, %v708_v47 }
 0x1b5   :  { %v712_v17 = vsel %vm711_vm5, %v710_v16, -inf }
 0x1b6   :  { %713 = vmax.xlane.f32.xlu0 %v712_v17 }
 0x1b9   :  { %v744_v13 = vpop.permute.xlu1 %743 }
 0x1ba   :  { %v745_v19 = vadd.f32 %v744_v13, %v742_v18 }
 0x1bc   :  { %v746_v8 = vmul.f32 %v745_v19, %v1521_v40 }
 0x1be   :  { %748 = vst.msk [vmem:[#allocation5] sm:$0x1] %vm747_vm0, %v746_v8 }
 0x1bf   :  { %772 = dma.vmem_to_hbm [thread:$0]  %s768_s9, 16, %s770_s10, [#allocation6]  }
 0x229   :  { %v714_v21 = vpop.xlane.xlu0 %713 }
 0x22a   :  { %v715_v23 = vsub.f32 %v710_v16, %v714_v21 }
 0x22c   :  { %v716_v24 = vmul.f32 1.442695, %v715_v23 }
 0x22e   :  { %892 = vpow2.f32 %v716_v24 }
 0x234   :  { %v893_v1 = vpop.eup %892 }
 0x235   :  { %v718_v25 = vsel %vm711_vm5, %v893_v1, 0.0 }
 0x236   :  { %719 = vadd.xlane.f32.xlu2 %v718_v25 }
 0x2a9   :  { %v720_v14 = vpop.xlane.xlu2 %719 }
 0x2aa   :  { %894 = vrcp.f32 %v720_v14  ;;  %v732_v5 = vand.u32 2147483648, %v720_v14  ;;  %v730_v27 = vand.u32 2147483647, %v720_v14  ;;  %vm726_vm7 = vweird.f32 %v720_v14 }
 0x2ac   :  { %v733_v30 = vor.u32 1.1754944e-38, %v732_v5  ;;  %vm731_vm9 = vcmp.eq.f32.partialorder %v730_v27, 8.507059e+37 }
 0x2b0   :  { %v895_v40 = vpop.eup %894 }
 0x2b1   :  { %v722_v20 = vmul.f32 %v895_v40, %v720_v14  ;;  %vm727_vm6 = vweird.f32 %v895_v40 }
 0x2b2   :  { %vm728_vm8 = vmor %vm726_vm7, %vm727_vm6 }
 0x2b3   :  { %v723_v34 = vsub.f32 1.0, %v722_v20 }
 0x2b5   :  { %v724_v10 = vmul.f32 %v895_v40, %v723_v34 }
 0x2b7   :  { %v725_v0 = vadd.f32 %v895_v40, %v724_v10 }
 0x2b9   :  { %v729_v31 = vsel %vm728_vm8, %v895_v40, %v725_v0 }
 0x2ba   :  { %v734_v26 = vsel %vm731_vm9, %v733_v30, %v729_v31 }
 0x2bb   :  { %v735_v32 = vmul.f32 %v893_v1, %v734_v26 }
 0x2bd   :  { %736 = vst.msk [vmem:[#allocation3] sm:$0x1] %vm711_vm5, %v735_v32 }
 0x2be   :  { %761 = dma.vmem_to_hbm [thread:$0]  %s757_s13, 16, %s759_s15, [#allocation4]  }
 0x2bf   :  { %944 = dma.done.wait [#allocation4], 16  }
 0x2c0   :  { %945 = vsyncadd [#allocation4], 4294967280 }
 0x2c1   :  { %946 = dma.done.wait [#allocation6], 16  }
 0x2c2   :  { %947 = vsyncadd [#allocation6], 4294967280 }
 0x2c3   :  { %783 = vsyncpa [#allocation4], 1 }
 0x2c4   :  { %784 = vsyncpa [#allocation6], 1 }

</bundles_post_ra>
